<compile_context>
chip_gen: v7x
topology: tpu7x:2x2x1
jax: 0.10.0
libtpu: 0.0.40
codegen_flags: <defaults>
</compile_context>

<pallas_src>
import jax
import jax.numpy as jnp
from jax import lax
from jax.experimental import pallas as pl
from jax.experimental.pallas import tpu as pltpu

F32 = jnp.float32
BF16 = jnp.bfloat16
LEAKY_SLOPE = 0.01          # torch.nn.LeakyReLU default (cls head & WptEncoder)
NEG_BIG = -1e9              # padding bias for padded softmax columns
VMEM = pltpu.MemorySpace.VMEM
SMEM = pltpu.MemorySpace.SMEM


def _leaky_relu(x):
    return jnp.where(x > 0, x, LEAKY_SLOPE * x)


def _vmem_limit_bytes():
    # Generation-aware scoped-VMEM limit: ~3/4 of physical VMEM (96 MiB on
    # v5e/v6e, 48 MiB on v7x); safe 32 MiB fallback if the query fails.
    try:
        cap = int(pltpu.get_tpu_info().vmem_capacity_bytes)
        return int(min(cap * 3 // 4, 96 * 1024 * 1024))
    except Exception:
        return 32 * 1024 * 1024


# ----------------------------------------------------------------------------
# Kernel 1: per-point backbone + affordance head (tiled over batch x points).
# ----------------------------------------------------------------------------
def _backbone_kernel(pcs_ref, w1_ref, b1_ref, w2_ref, b2_ref, w3_ref, wa_ref,
                     ba_ref, feat_ref, aff_ref):
    # pcs_ref : (3, TN) channel-first point tile (batch dim squeezed by spec).
    # feat_ref: (Cf, TN) bf16 per-point features (Conv1d layout), lane-dense.
    # aff_ref : (1, TN) f32 affordance logits.
    x = pcs_ref[...].astype(BF16)                                    # (3, TN)

    # TODO(synk): PointNet++ SA/FP replaced by shared per-point MLP (see header).
    h1 = jnp.maximum(
        jnp.dot(w1_ref[...], x, preferred_element_type=F32) + b1_ref[...], 0.0)
    h2 = jnp.maximum(
        jnp.dot(w2_ref[...], h1.astype(BF16), preferred_element_type=F32)
        + b2_ref[...], 0.0)
    feats = jnp.maximum(
        jnp.dot(w3_ref[...], h2.astype(BF16), preferred_element_type=F32), 0.0)

    # affordance head (eval-mode Dropout = identity): Conv1d(Cf, 1, k=1) done
    # as a VPU multiply + sublane reduce (rides the XLU, no M=1 MXU round-trip)
    aff = jnp.sum(wa_ref[...] * feats, axis=0, keepdims=True) + ba_ref[0]

    feat_ref[...] = feats.astype(BF16)
    aff_ref[...] = aff


# ----------------------------------------------------------------------------
# Kernel 2: fused part-selection + cls head + waypoint encoder + LSTM decoder.
# ----------------------------------------------------------------------------
def _head_kernel(thr_ref, feat_ref, aff_ref, traj_ref,
                 cw1_ref, cb1_ref, cw2_ref, cb2_ref, cw3_ref, cb3_ref,
                 tw1_ref, tb1_ref, tw2_ref, tb2_ref, tw3_ref, tb3_ref,
                 wihs_ref, wiht_ref, whh_ref, blstm_ref, wdec_ref, bdec_ref,
                 diff_ref, out_ref,
                 fpart_sc, gx_sc, h_sc):
    k = pl.program_id(0)

    # ---- part selection (tiled over points): masked max accumulator.
    # mask == (affordance_norm > 0.2), expressed in logit space with a host-
    # precomputed threshold.  feats are ReLU outputs (>= 0) and in the
    # non-degenerate case the mask is non-empty per batch, so 0 is an exact
    # identity element for the running max.  (If the affordance map is exactly
    # flat the mask is empty and f_part is 0 for that batch; the PyTorch code
    # would NaN/err there.)
    feats = feat_ref[...].astype(F32)                  # (B, Cf, TNH)
    mask = aff_ref[...] > thr_ref[...]                 # (B, 1, TNH)
    tile_max = jnp.max(jnp.where(mask, feats, 0.0), axis=2)      # (B, Cf)

    @pl.when(k == 0)
    def _():
        fpart_sc[...] = jnp.zeros_like(fpart_sc)

    fpart_sc[...] = jnp.maximum(fpart_sc[...], tile_max)

    # ---- everything else runs once, on the last grid step.
    @pl.when(k == pl.num_programs(0) - 1)
    def _():
        f_part = fpart_sc[...]                         # (B, Cf) f32
        f_part_b = f_part.astype(BF16)

        # classification head + log_softmax (cols >= ncls carry a -1e9 pad
        # bias so they vanish from the softmax; wrapper slices [:, :ncls]).
        h = _leaky_relu(jnp.dot(f_part_b, cw1_ref[...],
                                preferred_element_type=F32) + cb1_ref[...])
        h = _leaky_relu(jnp.dot(h.astype(BF16), cw2_ref[...],
                                preferred_element_type=F32) + cb2_ref[...])
        logits = (jnp.dot(h.astype(BF16), cw3_ref[...],
                          preferred_element_type=F32) + cb3_ref[...])  # (B,128)
        m = jnp.max(logits, axis=-1, keepdims=True)
        z = logits - m
        lse = jnp.log(jnp.sum(jnp.exp(z), axis=-1, keepdims=True))
        diff_ref[...] = z - lse                                        # lane-dense

        # waypoint encoder (WptEncoder MLP per waypoint), time-major input.
        xt = traj_ref[...].astype(F32)                 # (T, B, W)
        T, Bc, W = xt.shape
        x2 = xt.reshape(T * Bc, W)
        th = _leaky_relu(jnp.dot(x2.astype(BF16), tw1_ref[...],
                                 preferred_element_type=F32) + tb1_ref[...])
        th = _leaky_relu(jnp.dot(th.astype(BF16), tw2_ref[...],
                                 preferred_element_type=F32) + tb2_ref[...])
        f_traj = (jnp.dot(th.astype(BF16), tw3_ref[...],
                          preferred_element_type=F32) + tb3_ref[...])  # (T*B, Wf)

        # LSTM input projection hoisted out of the recurrence.  f_all =
        # concat([f_part repeated over T, f_traj]); the concat is folded into a
        # split of w_ih:  gates_x = f_part @ wih[:Cf] + f_traj @ wih[Cf:] + b
        gx_s = jnp.dot(f_part_b, wihs_ref[...],
                       preferred_element_type=F32)                     # (B, 4H)
        gx_t = jnp.dot(f_traj.astype(BF16), wiht_ref[...],
                       preferred_element_type=F32)                     # (T*B, 4H)
        H4 = gx_s.shape[-1]
        gx_sc[...] = gx_t.reshape(T, Bc, H4) + gx_s + blstm_ref[...]   # (T,B,4H)

        # recurrence: single-layer LSTM, zero init.  Gate columns are
        # pre-permuted to [i, f, o, g] so we issue ONE sigmoid over (B, 3H)
        # and ONE tanh over (B, H) per step; w_hh is bf16 (f32 accumulation)
        # to cut MXU passes on the serial critical path.
        Hd = h_sc.shape[-1]
        whh = whh_ref[...]                              # bf16 (H, 4H)

        def step(t, carry):
            h_t, c_t = carry
            gates = gx_sc[t] + jnp.dot(h_t.astype(BF16), whh,
                                       preferred_element_type=F32)
            sig = jax.nn.sigmoid(gates[:, :3 * Hd])
            i_g = sig[:, 0 * Hd:1 * Hd]
            f_g = sig[:, 1 * Hd:2 * Hd]
            o_g = sig[:, 2 * Hd:3 * Hd]
            g_g = jnp.tanh(gates[:, 3 * Hd:])
            c_n = f_g * c_t + i_g * g_g
            h_n = o_g * jnp.tanh(c_n)
            h_sc[t] = h_n
            return h_n, c_n

        h0 = jnp.zeros((Bc, Hd), F32)
        c0 = jnp.zeros((Bc, Hd), F32)
        lax.fori_loop(0, T, step, (h0, c0), unroll=True)

        # pos decoder hoisted out of the loop: one batched matmul, one
        # lane-dense (padded-to-128) store.  Wrapper slices [:, :, :wpt_dim].
        hs = h_sc[...].reshape(T * Bc, Hd)
        dec = (jnp.dot(hs.astype(BF16), wdec_ref[...],
                       preferred_element_type=F32) + bdec_ref[...])    # (T*B,128)
        out_ref[...] = dec.reshape(T, Bc, dec.shape[-1])


# ----------------------------------------------------------------------------
# Parameter init (deterministic, synthetic) -- PyTorch-like orientation.
# ----------------------------------------------------------------------------
def init_params(key, pcd_feat_dim=32, wpt_feat_dim=64, hidden_dim=128, wpt_dim=9):
    keys = iter(jax.random.split(key, 32))

    def w(shape, fan_in):
        return (jax.random.normal(next(keys), shape, F32)
                / jnp.sqrt(float(fan_in))).astype(F32)

    din = pcd_feat_dim + wpt_feat_dim
    return dict(
        # PointNet++ substitute (6-channel input, like pcs.repeat(1,1,2))
        w1=w((6, 64), 6), b1=w((64,), 64),
        w2=w((64, 128), 64), b2=w((128,), 128),
        w3=w((128, pcd_feat_dim), 128),            # fc_layer Conv1d bias=False
        # affordance head: Conv1d(pcd_feat_dim, 1, k=1)
        wa=w((pcd_feat_dim,), pcd_feat_dim), ba=w((), 1),
        # classification head
        cw1=w((pcd_feat_dim, 32), pcd_feat_dim), cb1=w((32,), 32),
        cw2=w((32, 32), 32), cb2=w((32,), 32),
        cw3=w((32, 4), 32), cb3=w((4,), 32),
        # waypoint encoder
        tw1=w((wpt_dim, 32), wpt_dim), tb1=w((32,), 32),
        tw2=w((32, 64), 32), tb2=w((64,), 64),
        tw3=w((64, wpt_feat_dim), 64), tb3=w((wpt_feat_dim,), 64),
        # LSTM decoder (decoder_layers=1) + pos decoder
        wih=w((din, 4 * hidden_dim), din),
        whh=w((hidden_dim, 4 * hidden_dim), hidden_dim),
        b_lstm=w((4 * hidden_dim,), hidden_dim),   # b_ih + b_hh folded
        wdec=w((hidden_dim, wpt_dim), hidden_dim),
        bdec=w((wpt_dim,), hidden_dim),
    )


# ----------------------------------------------------------------------------
# Host-side weight prep (run once).
# ----------------------------------------------------------------------------
def prepare_params(params, lane_pad=128):
    """ - fold pcs.repeat(1,1,2) into the first backbone layer (w1[:3]+w1[3:6])
        - transpose backbone weights to channel-first (Conv1d) orientation
        - cast MXU operands to bf16 (accumulation stays f32 in-kernel)
        - split LSTM w_ih so the [f_s_repeat | f_traj] concat is free; permute
          gate columns [i,f,g,o] -> [i,f,o,g]; w_hh in bf16 (serial path)
        - pad cls / pos-decoder output columns to 128 (lane-dense stores)."""
    Cf = params['w3'].shape[1]
    ncls = params['cw3'].shape[1]
    wpt = params['wdec'].shape[1]
    H = params['whh'].shape[0]

    def col(b):
        return b.reshape(-1, 1).astype(F32)

    def row(b):
        return b.reshape(1, -1).astype(F32)

    def reorder_gates(w):
        # PyTorch LSTM gate order [i, f, g, o] -> [i, f, o, g]
        i = w[..., 0 * H:1 * H]
        f = w[..., 1 * H:2 * H]
        g = w[..., 2 * H:3 * H]
        o = w[..., 3 * H:4 * H]
        return jnp.concatenate([i, f, o, g], axis=-1)

    cw3p = jnp.zeros((params['cw3'].shape[0], lane_pad), F32
                     ).at[:, :ncls].set(params['cw3'])
    cb3p = jnp.full((1, lane_pad), NEG_BIG, F32
                    ).at[:, :ncls].set(params['cb3'][None, :])
    wdecp = jnp.zeros((params['wdec'].shape[0], lane_pad), F32
                      ).at[:, :wpt].set(params['wdec'])
    bdecp = jnp.zeros((1, lane_pad), F32).at[:, :wpt].set(params['bdec'][None, :])

    return dict(
        # backbone, channel-first
        w1=(params['w1'][:3] + params['w1'][3:6]).T.astype(BF16),   # (64, 3)
        b1=col(params['b1']),
        w2=params['w2'].T.astype(BF16),                             # (128, 64)
        b2=col(params['b2']),
        w3=params['w3'].T.astype(BF16),                             # (Cf, 128)
        wa=params['wa'].reshape(Cf, 1).astype(F32),   # VPU mul + sublane reduce
        ba=params['ba'].reshape(1).astype(F32),       # SMEM scalar
        # classification head (last layer lane-padded)
        cw1=params['cw1'].astype(BF16), cb1=row(params['cb1']),
        cw2=params['cw2'].astype(BF16), cb2=row(params['cb2']),
        cw3=cw3p.astype(BF16), cb3=cb3p,
        # waypoint encoder
        tw1=params['tw1'].astype(BF16), tb1=row(params['tb1']),
        tw2=params['tw2'].astype(BF16), tb2=row(params['tb2']),
        tw3=params['tw3'].astype(BF16), tb3=row(params['tb3']),
        # LSTM: input projection split (pcd part / traj part), gates [i,f,o,g]
        wih_s=reorder_gates(params['wih'][:Cf]).astype(BF16),
        wih_t=reorder_gates(params['wih'][Cf:]).astype(BF16),
        whh=reorder_gates(params['whh']).astype(BF16),
        b_lstm=row(reorder_gates(params['b_lstm'])),
        # pos decoder, lane-padded
        wdec=wdecp.astype(BF16), bdec=bdecp,
        meta=dict(Cf=Cf, ncls=ncls, wpt=wpt, H=H),
    )


# ----------------------------------------------------------------------------
# Forward wrapper == TrajDeformFusionLSTM.forward(iter, pcs, temp_traj)
# ----------------------------------------------------------------------------
def traj_deform_fusion_forward(dparams, it, pcs, temp_traj, *,
                               num_steps, train_traj_start=1000, dataset_type=0,
                               tile_n=512, tile_head=512):
    B, N, _ = pcs.shape
    Cf = dparams['meta']['Cf']
    ncls = dparams['meta']['ncls']
    wpt = dparams['meta']['wpt']
    H = dparams['meta']['H']
    T = num_steps
    assert temp_traj.shape[1] == T
    assert N % 128 == 0

    tile_n = min(tile_n, N)
    tile_head = min(tile_head, N)
    assert N % tile_n == 0 and tile_n % 128 == 0
    assert N % tile_head == 0 and tile_head % 128 == 0
    # keep >= 2 backbone grid steps so v7x's second TensorCore gets work
    if B * (N // tile_n) < 2 and tile_n >= 256 and (tile_n // 2) % 128 == 0:
        tile_n //= 2
    vmem_limit = _vmem_limit_bytes()

    # --- backbone: per-point MLP + affordance head, tiled over (batch, points)
    pcs_cf = jnp.transpose(pcs, (0, 2, 1))                        # (B, 3, N)
    bk_in_specs = (
        [pl.BlockSpec((None, 3, tile_n), lambda b, n: (b, 0, n))]
        + [pl.BlockSpec(memory_space=VMEM)] * 6                   # w1,b1,w2,b2,w3,wa
        + [pl.BlockSpec(memory_space=SMEM)])                      # ba (scalar)

    feats, aff = pl.pallas_call(
        _backbone_kernel,
        out_shape=(jax.ShapeDtypeStruct((B, Cf, N), BF16),
                   jax.ShapeDtypeStruct((B, 1, N), F32)),
        grid=(B, N // tile_n),
        in_specs=bk_in_specs,
        out_specs=(pl.BlockSpec((None, Cf, tile_n), lambda b, n: (b, 0, n)),
                   pl.BlockSpec((None, 1, tile_n), lambda b, n: (b, 0, n))),
        compiler_params=pltpu.CompilerParams(
            dimension_semantics=("parallel", "parallel"),
            vmem_limit_bytes=vmem_limit),
    )(pcs_cf, dparams['w1'], dparams['b1'], dparams['w2'], dparams['b2'],
      dparams['w3'], dparams['wa'], dparams['ba'])

    affordance = aff                                              # (B, 1, N) logits

    if it < train_traj_start:   # static (Python-level) control flow, as in PyTorch
        return None, affordance, None

    # --- template trajectory alignment (tiny, stays in XLA) ------------------
    contact_point = pcs[:, 0, :3]
    align_offset = temp_traj[:, 0, :3] - contact_point
    if dataset_type == 0:
        temp_traj_clone = temp_traj.at[:, :, :3].add(-align_offset[:, None, :])
    elif dataset_type == 1:
        temp_traj_clone = temp_traj.at[:, 0, :3].add(-align_offset)
    else:
        temp_traj_clone = temp_traj
    traj_tm = jnp.transpose(temp_traj_clone, (1, 0, 2))           # (T, B, wpt)

    # --- part-selection threshold in logit space (tiny (B,1,N) XLA reduce).
    # affordance_norm > 0.2  <=>  sigmoid(aff) > smin + 0.2*(smax - smin)
    #                        <=>  aff > logit(thr)     (sigmoid is monotone).
    lmin = jnp.min(aff, axis=2, keepdims=True)
    lmax = jnp.max(aff, axis=2, keepdims=True)
    smin = jax.nn.sigmoid(lmin)
    smax = jax.nn.sigmoid(lmax)
    thr_s = smin + 0.2 * (smax - smin)                            # in (0, 1)
    thr_logit = jnp.log(thr_s) - jnp.log1p(-thr_s)                # (B, 1, 1)

    # --- fused head: part-max + cls head + wpt encoder + LSTM decoder --------
    cls_pad = dparams['cw3'].shape[1]
    out_pad = dparams['wdec'].shape[1]

    hd_in_specs = (
        [pl.BlockSpec(memory_space=VMEM),                                  # thr
         pl.BlockSpec((B, Cf, tile_head), lambda k: (0, 0, k)),            # feats
         pl.BlockSpec((B, 1, tile_head), lambda k: (0, 0, k))]             # aff
        + [pl.BlockSpec(memory_space=VMEM)] * 19)                          # weights

    diff_pad, out_tm = pl.pallas_call(
        _head_kernel,
        out_shape=(jax.ShapeDtypeStruct((B, cls_pad), F32),
                   jax.ShapeDtypeStruct((T, B, out_pad), F32)),
        grid=(N // tile_head,),
        in_specs=hd_in_specs,
        out_specs=(pl.BlockSpec((B, cls_pad), lambda k: (0, 0)),
                   pl.BlockSpec((T, B, out_pad), lambda k: (0, 0, 0))),
        scratch_shapes=[pltpu.VMEM((B, Cf), F32),          # masked-max accum
                        pltpu.VMEM((T, B, 4 * H), F32),    # hoisted gates_x
                        pltpu.VMEM((T, B, H), F32)],       # hidden states
        compiler_params=pltpu.CompilerParams(
            dimension_semantics=("arbitrary",),
            vmem_limit_bytes=vmem_limit),
    )(thr_logit, feats, aff, traj_tm,
      dparams['cw1'], dparams['cb1'], dparams['cw2'], dparams['cb2'],
      dparams['cw3'], dparams['cb3'],
      dparams['tw1'], dparams['tb1'], dparams['tw2'], dparams['tb2'],
      dparams['tw3'], dparams['tb3'],
      dparams['wih_s'], dparams['wih_t'], dparams['whh'], dparams['b_lstm'],
      dparams['wdec'], dparams['bdec'])

    difficulty = diff_pad[:, :ncls]                                     # (B, 4)
    traj_deform_offset = jnp.transpose(out_tm, (1, 0, 2))[:, :, :wpt]   # (B, T, wpt)
    return difficulty, affordance, traj_deform_offset


if __name__ == "__main__":
    key = jax.random.PRNGKey(0)
    pkey, k_pcs, k_traj = jax.random.split(key, 3)

    # small shapes consistent with the module
    B, N = 2, 512                 # batch, number of points
    NUM_STEPS, WPT_DIM = 8, 9
    PCD_FEAT, WPT_FEAT, HIDDEN = 32, 64, 128

    params = init_params(pkey, pcd_feat_dim=PCD_FEAT, wpt_feat_dim=WPT_FEAT,
                         hidden_dim=HIDDEN, wpt_dim=WPT_DIM)
    dparams = prepare_params(params)

    pcs = jax.random.normal(k_pcs, (B, N, 3), F32)
    temp_traj = jax.random.normal(k_traj, (B, NUM_STEPS, WPT_DIM), F32)

    # affordance-only phase (iter < train_traj_start)
    d0, a0, t0 = traj_deform_fusion_forward(
        dparams, it=0, pcs=pcs, temp_traj=temp_traj,
        num_steps=NUM_STEPS, train_traj_start=1000, dataset_type=0)
    jax.block_until_ready(a0)
    assert d0 is None and t0 is None and a0.shape == (B, 1, N)

    # full phase
    difficulty, affordance, traj_deform_offset = traj_deform_fusion_forward(
        dparams, it=2000, pcs=pcs, temp_traj=temp_traj,
        num_steps=NUM_STEPS, train_traj_start=1000, dataset_type=0)
    jax.block_until_ready((difficulty, affordance, traj_deform_offset))

    assert difficulty.shape == (B, 4)
    assert affordance.shape == (B, 1, N)
    assert traj_deform_offset.shape == (B, NUM_STEPS, WPT_DIM)
    assert bool(jnp.all(jnp.isfinite(difficulty)))
    assert bool(jnp.all(jnp.isfinite(affordance)))
    assert bool(jnp.all(jnp.isfinite(traj_deform_offset)))
    print("KERNEL_OK")
</pallas_src>

<mosaic_0001>
module attributes {stable_mosaic.version = 11 : i64} {
  func.func @_backbone_kernel(%arg0: i32, %arg1: i32, %arg2: memref<1x3x512xf32, #tpu.memory_space<vmem>>, %arg3: memref<64x3xbf16, #tpu.memory_space<vmem>>, %arg4: memref<64x1xf32, #tpu.memory_space<vmem>>, %arg5: memref<128x64xbf16, #tpu.memory_space<vmem>>, %arg6: memref<128x1xf32, #tpu.memory_space<vmem>>, %arg7: memref<32x128xbf16, #tpu.memory_space<vmem>>, %arg8: memref<32x1xf32, #tpu.memory_space<vmem>>, %arg9: memref<1xf32, #tpu.memory_space<smem>>, %arg10: memref<1x32x512xbf16, #tpu.memory_space<vmem>>, %arg11: memref<1x1x512xf32, #tpu.memory_space<vmem>>) attributes {dimension_semantics = [#tpu.dimension_semantics<parallel>, #tpu.dimension_semantics<parallel>], iteration_bounds = array<i64: 2, 1>, scalar_prefetch = 0 : i64, scratch_operands = 0 : i64, tpu.core_type = #tpu.core_type<tc>, window_params = [{transform_indices = @transform_0, window_bounds = array<i64: 1, 3, 512>}, {pipeline_mode = #tpu.pipeline_mode<synchronous>, transform_indices = @transform_1, window_bounds = array<i64: 64, 3>}, {pipeline_mode = #tpu.pipeline_mode<synchronous>, transform_indices = @transform_2, window_bounds = array<i64: 64, 1>}, {pipeline_mode = #tpu.pipeline_mode<synchronous>, transform_indices = @transform_3, window_bounds = array<i64: 128, 64>}, {pipeline_mode = #tpu.pipeline_mode<synchronous>, transform_indices = @transform_4, window_bounds = array<i64: 128, 1>}, {pipeline_mode = #tpu.pipeline_mode<synchronous>, transform_indices = @transform_5, window_bounds = array<i64: 32, 128>}, {pipeline_mode = #tpu.pipeline_mode<synchronous>, transform_indices = @transform_6, window_bounds = array<i64: 32, 1>}, {transform_indices = @transform_7, window_bounds = array<i64: 1>}, {transform_indices = @transform_8, window_bounds = array<i64: 1, 32, 512>}, {transform_indices = @transform_9, window_bounds = array<i64: 1, 1, 512>}]} {
    %c0 = arith.constant 0 : index
    %c0_0 = arith.constant 0 : index
    %c0_1 = arith.constant 0 : index
    %0 = vector.load %arg2[%c0, %c0_0, %c0_1] : memref<1x3x512xf32, #tpu.memory_space<vmem>>, vector<1x3x512xf32>
    %1 = vector.shape_cast %0 : vector<1x3x512xf32> to vector<3x512xf32>
    %2 = arith.truncf %1 : vector<3x512xf32> to vector<3x512xbf16>
    %c0_2 = arith.constant 0 : index
    %c0_3 = arith.constant 0 : index
    %3 = vector.load %arg3[%c0_2, %c0_3] : memref<64x3xbf16, #tpu.memory_space<vmem>>, vector<64x3xbf16>
    %cst = arith.constant dense<0.000000e+00> : vector<64x512xf32>
    %4 = tpu.matmul %3, %2, %cst {dimension_numbers = #tpu.dot_dimension_numbers<[1], [0], [0], [1], [0, 0, 1, 1], [], []>} : vector<64x3xbf16>, vector<3x512xbf16>, vector<64x512xf32> -> vector<64x512xf32>
    %c0_4 = arith.constant 0 : index
    %c0_5 = arith.constant 0 : index
    %5 = vector.load %arg4[%c0_4, %c0_5] : memref<64x1xf32, #tpu.memory_space<vmem>>, vector<64x1xf32>
    %6 = vector.broadcast %5 : vector<64x1xf32> to vector<64x512xf32>
    %7 = arith.addf %4, %6 : vector<64x512xf32>
    %cst_6 = arith.constant 0.000000e+00 : f32
    %8 = vector.broadcast %cst_6 : f32 to vector<64x512xf32>
    %9 = arith.maximumf %7, %8 : vector<64x512xf32>
    %c0_7 = arith.constant 0 : index
    %c0_8 = arith.constant 0 : index
    %10 = vector.load %arg5[%c0_7, %c0_8] : memref<128x64xbf16, #tpu.memory_space<vmem>>, vector<128x64xbf16>
    %11 = arith.truncf %9 : vector<64x512xf32> to vector<64x512xbf16>
    %cst_9 = arith.constant dense<0.000000e+00> : vector<128x512xf32>
    %12 = tpu.matmul %10, %11, %cst_9 {dimension_numbers = #tpu.dot_dimension_numbers<[1], [0], [0], [1], [0, 0, 1, 1], [], []>} : vector<128x64xbf16>, vector<64x512xbf16>, vector<128x512xf32> -> vector<128x512xf32>
    %c0_10 = arith.constant 0 : index
    %c0_11 = arith.constant 0 : index
    %13 = vector.load %arg6[%c0_10, %c0_11] : memref<128x1xf32, #tpu.memory_space<vmem>>, vector<128x1xf32>
    %14 = vector.broadcast %13 : vector<128x1xf32> to vector<128x512xf32>
    %15 = arith.addf %12, %14 : vector<128x512xf32>
    %cst_12 = arith.constant 0.000000e+00 : f32
    %16 = vector.broadcast %cst_12 : f32 to vector<128x512xf32>
    %17 = arith.maximumf %15, %16 : vector<128x512xf32>
    %c0_13 = arith.constant 0 : index
    %c0_14 = arith.constant 0 : index
    %18 = vector.load %arg7[%c0_13, %c0_14] : memref<32x128xbf16, #tpu.memory_space<vmem>>, vector<32x128xbf16>
    %19 = arith.truncf %17 : vector<128x512xf32> to vector<128x512xbf16>
    %cst_15 = arith.constant dense<0.000000e+00> : vector<32x512xf32>
    %20 = tpu.matmul %18, %19, %cst_15 {dimension_numbers = #tpu.dot_dimension_numbers<[1], [0], [0], [1], [0, 0, 1, 1], [], []>} : vector<32x128xbf16>, vector<128x512xbf16>, vector<32x512xf32> -> vector<32x512xf32>
    %cst_16 = arith.constant 0.000000e+00 : f32
    %21 = vector.broadcast %cst_16 : f32 to vector<32x512xf32>
    %22 = arith.maximumf %20, %21 : vector<32x512xf32>
    %c0_17 = arith.constant 0 : index
    %c0_18 = arith.constant 0 : index
    %23 = vector.load %arg8[%c0_17, %c0_18] : memref<32x1xf32, #tpu.memory_space<vmem>>, vector<32x1xf32>
    %24 = vector.broadcast %23 : vector<32x1xf32> to vector<32x512xf32>
    %25 = arith.mulf %24, %22 : vector<32x512xf32>
    %cst_19 = arith.constant dense<0.000000e+00> : vector<512xf32>
    %26 = vector.multi_reduction <add>, %25, %cst_19 [0] : vector<32x512xf32> to vector<512xf32>
    %27 = vector.shape_cast %26 : vector<512xf32> to vector<1x512xf32>
    %c0_20 = arith.constant 0 : index
    %28 = memref.load %arg9[%c0_20] : memref<1xf32, #tpu.memory_space<smem>>
    %29 = vector.broadcast %28 : f32 to vector<1x512xf32>
    %30 = arith.addf %27, %29 : vector<1x512xf32>
    %31 = arith.truncf %22 : vector<32x512xf32> to vector<32x512xbf16>
    %c0_21 = arith.constant 0 : index
    %c0_22 = arith.constant 0 : index
    %c0_23 = arith.constant 0 : index
    %32 = vector.load %arg10[%c0_21, %c0_22, %c0_23] : memref<1x32x512xbf16, #tpu.memory_space<vmem>>, vector<1x32x512xbf16>
    %33 = vector.shape_cast %32 : vector<1x32x512xbf16> to vector<32x512xbf16>
    %34 = vector.shape_cast %31 : vector<32x512xbf16> to vector<1x32x512xbf16>
    tpu.vector_store %arg10[%c0_21, %c0_22, %c0_23], %34 {strides = array<i32>} : memref<1x32x512xbf16, #tpu.memory_space<vmem>>, vector<1x32x512xbf16>,
    %c0_24 = arith.constant 0 : index
    %c0_25 = arith.constant 0 : index
    %c0_26 = arith.constant 0 : index
    %35 = vector.load %arg11[%c0_24, %c0_25, %c0_26] : memref<1x1x512xf32, #tpu.memory_space<vmem>>, vector<1x1x512xf32>
    %36 = vector.shape_cast %35 : vector<1x1x512xf32> to vector<1x512xf32>
    %37 = vector.shape_cast %30 : vector<1x512xf32> to vector<1x1x512xf32>
    tpu.vector_store %arg11[%c0_24, %c0_25, %c0_26], %37 {strides = array<i32>} : memref<1x1x512xf32, #tpu.memory_space<vmem>>, vector<1x1x512xf32>,
    return
  }
  func.func @transform_0(%arg0: i32, %arg1: i32) -> (i32, i32, i32) {
    %c0_i32 = arith.constant 0 : i32
    %c0_i32_0 = arith.constant 0 : i32
    return %arg0, %c0_i32, %arg1 : i32, i32, i32
  }
  func.func @transform_1(%arg0: i32, %arg1: i32) -> (i32, i32) {
    %c0_i32 = arith.constant 0 : i32
    %c0_i32_0 = arith.constant 0 : i32
    %c0_i32_1 = arith.constant 0 : i32
    return %c0_i32, %c0_i32_0 : i32, i32
  }
  func.func @transform_2(%arg0: i32, %arg1: i32) -> (i32, i32) {
    %c0_i32 = arith.constant 0 : i32
    %c0_i32_0 = arith.constant 0 : i32
    %c0_i32_1 = arith.constant 0 : i32
    return %c0_i32, %c0_i32_0 : i32, i32
  }
  func.func @transform_3(%arg0: i32, %arg1: i32) -> (i32, i32) {
    %c0_i32 = arith.constant 0 : i32
    %c0_i32_0 = arith.constant 0 : i32
    %c0_i32_1 = arith.constant 0 : i32
    return %c0_i32, %c0_i32_0 : i32, i32
  }
  func.func @transform_4(%arg0: i32, %arg1: i32) -> (i32, i32) {
    %c0_i32 = arith.constant 0 : i32
    %c0_i32_0 = arith.constant 0 : i32
    %c0_i32_1 = arith.constant 0 : i32
    return %c0_i32, %c0_i32_0 : i32, i32
  }
  func.func @transform_5(%arg0: i32, %arg1: i32) -> (i32, i32) {
    %c0_i32 = arith.constant 0 : i32
    %c0_i32_0 = arith.constant 0 : i32
    %c0_i32_1 = arith.constant 0 : i32
    return %c0_i32, %c0_i32_0 : i32, i32
  }
  func.func @transform_6(%arg0: i32, %arg1: i32) -> (i32, i32) {
    %c0_i32 = arith.constant 0 : i32
    %c0_i32_0 = arith.constant 0 : i32
    %c0_i32_1 = arith.constant 0 : i32
    return %c0_i32, %c0_i32_0 : i32, i32
  }
  func.func @transform_7(%arg0: i32, %arg1: i32) -> i32 {
    %c0_i32 = arith.constant 0 : i32
    %c0_i32_0 = arith.constant 0 : i32
    return %c0_i32 : i32
  }
  func.func @transform_8(%arg0: i32, %arg1: i32) -> (i32, i32, i32) {
    %c0_i32 = arith.constant 0 : i32
    %c0_i32_0 = arith.constant 0 : i32
    return %arg0, %c0_i32, %arg1 : i32, i32, i32
  }
  func.func @transform_9(%arg0: i32, %arg1: i32) -> (i32, i32, i32) {
    %c0_i32 = arith.constant 0 : i32
    %c0_i32_0 = arith.constant 0 : i32
    return %arg0, %c0_i32, %arg1 : i32, i32, i32
  }
}

</mosaic_0001>

<bundles_post_ra>
// kernel: tpu_custom_call.1
= control target key start
LH: loop header
LB: loop body
LE: loop exit
PB: predicated region body
PF: predicated region fallthrough
CT: control target
= control target key end

     0   :  { %s2321_s0 = inlined_call_operand.vmem [shape: f32[2,3,512], index: 0, kind: input, shape index: {}]   ;;  %s2322_s1 = inlined_call_operand.vmem [shape: bf16[64,3], index: 1, kind: input, shape index: {}]   ;;  %s2323_s2 = inlined_call_operand.vmem [shape: f32[64,1], index: 2, kind: input, shape index: {}]   ;;  %s2324_s3 = inlined_call_operand.vmem [shape: bf16[128,64], index: 3, kind: input, shape index: {}]   ;;  %s2325_s4 = inlined_call_operand.vmem [shape: f32[128,1], index: 4, kind: input, shape index: {}]   ;;  %s2326_s5 = inlined_call_operand.vmem [shape: bf16[32,128], index: 5, kind: input, shape index: {}]   ;;  %s2327_s6 = inlined_call_operand.vmem [shape: f32[32,1], index: 6, kind: input, shape index: {}]   ;;  %s2328_s7 = inlined_call_operand.<no memory space> [shape: f32[1], index: 7, kind: input, shape index: {}]   ;;  %s2329_s8 = inlined_call_operand.hbm [shape: bf16[2,32,512], index: 8, kind: output, shape index: {0}]   ;;  %s2330_s9 = inlined_call_operand.hbm [shape: f32[2,1,512], index: 9, kind: output, shape index: {1}]  }
   0x1   :  { %2331 = sst [smem:[#allocation9_spill]] %s2321_s0 }
   0x2   :  { %15 = sst [smem:[#allocation2]] %s2328_s7 }
   0x3   :  { %16 = vsyncpa [#allocation4], 0 }
   0x4   :  { %18 = vsyncpa [#allocation4 + $0x1], 0 }
   0x5   :  { %19 = vsyncpa [#allocation6], 0 }
   0x6   :  { %21 = vsyncpa [#allocation6 + $0x1], 0  ;;  %s1978_s11 = smov 0   ;;  %s1980_s12 = smov 0  }
   0x7   :  { %s1982_s13 = smov 0   ;;  %s1984_s14 = smov 0  }
   0x8   :  { %s1986_s15 = smov 0   ;;  %s1988_s16 = smov 0  }
   0x9 LB: > { %s1649_s7 = sadd.s32 4294967295, %s1916_s16   ;;  %s1650_s17 = sadd.s32 4294967294, %s1916_s16   ;;  %s1916_s16 = sphi %s1988_s16, %s27_s16   ;;  %s1912_s15 = sphi %s1986_s15, %s2340_s15   ;;  %s1908_s14 = sphi %s1984_s14, %s2339_s14   ;;  %s1904_s13 = sphi %s1982_s13, %s2338_s13   ;;  %s1900_s12 = sphi %s1980_s12, %s2337_s12   ;;  %s1896_s11 = sphi %s1978_s11, %s2336_s11  }
   0xa   : > { %s39_s18 = sadd.s32 1, %s1912_s15  ;;  %s223_s19 = sadd.s32 1, %s1904_s13 }
   0xb   : > { %p41_p0 = scmp.ge.s32.totalorder %s39_s18, 2  ;;  %p233_p1 = scmp.ne.s32.totalorder %s1904_s13, %s1900_s12 }
   0xc   : > { %p234_p2 = scmp.eq.s32.totalorder %s1649_s7, 1  ;;  %p239_p3 = scmp.ne.s32.totalorder %s1900_s12, %s1896_s11 }
   0xd   : > { %s2342_s18 = smov (%p41_p0, %s39_s18), 0  ;;  %p240_p5 = scmp.eq.s32.totalorder %s1650_s17, 1 }
   0xe   : > { %p2018_p4 = por %p234_p2, %p233_p1  ;;  %s218_s21 = ssub.s32 %s1912_s15, %s2342_s18 }
   0xf   : > { %p1653_p6 = scmp.ge.s32.totalorder %s1916_s16, 1  ;;  %p221_p7 = scmp.eq.s32.totalorder %s218_s21, 0 }
  0x10   : > { %p2025_p8 = por %p240_p5, %p239_p3  ;;  %p320_p9 = scmp.lt.s32.totalorder %s1916_s16, 3 }
  0x11   : > { %s2031_s23 = scalar_select %p221_p7, %s1904_s13, %s223_s19  }
  0x12   : > { %p321_p10 = pnand %p1653_p6, %p320_p9 }
  0x13   : > { %p366_p11 = scmp.lt.s32.totalorder (!%p321_p10), %s1908_s14, 1  ;;  %vm479_vm0 = vcmask (!%p321_p10), 1040384   ;;  %v1918_v0 = vmov (!%p321_p10), 0   ;;  %vm480_vm1 = vcmask (!%p321_p10), 1041408   ;;  %v1919_v1 = vmov (!%p321_p10), 65535   ;;  %s2334_s0 = sld [smem:[#allocation9_spill]] (!%p321_p10) }
  0x14   : > { %324 = sbr.rel (%p321_p10) target bundleno = 851 (0x353), region = 52  ;;  %527 = vmatprep.mubr.bf16.mxu0 (!%p321_p10), %v1918_v0  ;;  %600 = vmatprep.mubr.bf16.mxu1 (!%p321_p10), %v1918_v0  ;;  %v481_v2 = vsel (!%p321_p10), %vm479_vm0, 4294967295, %v1919_v1  ;;  %v398_v3 = vld [vmem:[%s2323_s2] sm:$0xff] (!%p321_p10)  ;;  %v400_v7 = vld [vmem:[%s2323_s2 + $0x10] sm:$0xff] (!%p321_p10)  ;;  %v399_v12 = vld [vmem:[%s2323_s2 + $0x8] sm:$0xff] (!%p321_p10)  ;;  %vm466_vm2 = vcmask (!%p321_p10), 23552  }
  0x15   : > { %1788 = vset.pattern.permute.xlu0 (!%p321_p10), %v1918_v0  ;;  %1789 = vset.pattern.permute.xlu1 (!%p321_p10), %v1918_v0  ;;  %v482_v5 = vsel (!%p321_p10), %vm480_vm1, %v481_v2, 0  ;;  %v401_v13 = vld [vmem:[%s2323_s2 + $0x18] sm:$0xff] (!%p321_p10)  ;;  %v402_v20 = vld [vmem:[%s2323_s2 + $0x20] sm:$0xff] (!%p321_p10)  ;;  %v403_v21 = vld [vmem:[%s2323_s2 + $0x28] sm:$0xff] (!%p321_p10)  ;;  %vm841_vm3 = vcmask (!%p321_p10), 523264   ;;  %s2219_s29 = sand.u32 (!%p321_p10), 1, %s1900_s12  }
  0x16   : > { %408 = vperm.xlu0 (!%p321_p10), %1788, %v398_v3   ;;  %418 = vperm.xlu1 (!%p321_p10), %1789, %v400_v7   ;;  %v1792_v22 = vld [vmem:[%s2322_s1] sm:$0xff] (!%p321_p10)   ;;  %v404_v23 = vld [vmem:[%s2323_s2 + $0x30] sm:$0xff] (!%p321_p10)  ;;  %v405_v24 = vld [vmem:[%s2323_s2 + $0x38] sm:$0xff] (!%p321_p10)  ;;  %s1654_s30 = sshll.u32 (!%p321_p10), %s2219_s29, 6  ;;  %s1721_s7 = sshll.u32 (!%p321_p10), %s1908_s14, 10 }
  0x17   : > { %v705_v25 = vld [vmem:[%s2325_s4] sm:$0xff] (!%p321_p10)  ;;  %v706_v26 = vld [vmem:[%s2325_s4 + $0x8] sm:$0xff] (!%p321_p10)  ;;  %v707_v28 = vld [vmem:[%s2325_s4 + $0x10] sm:$0xff] (!%p321_p10)  ;;  %s2222_s10 = scalar_lea.vmem (!%p321_p10), [#allocation3], %s1654_s30 }
  0x18   : > { %v1793_v27 = vld [vmem:[%s2322_s1 + $0x8] sm:$0xff] (!%p321_p10)   ;;  %v708_v29 = vld [vmem:[%s2325_s4 + $0x18] sm:$0xff] (!%p321_p10)  ;;  %v709_v30 = vld [vmem:[%s2325_s4 + $0x20] sm:$0xff] (!%p321_p10)  ;;  %s1519_s17 = sshll.u32 (!%p321_p10), %s2222_s10, 4  ;;  %s2237_s17 = int_to_ptr.vmem [resolvable:$true] %s1519_s17 }
  0x19   : > { %v710_v31 = vld [vmem:[%s2325_s4 + $0x28] sm:$0xff] (!%p321_p10)  ;;  %v1794_v32 = vld [vmem:[%s2322_s1 + $0x10] sm:$0xff] (!%p321_p10)   ;;  %v712_v34 = vld [vmem:[%s2325_s4 + $0x38] sm:$0xff] (!%p321_p10)  ;;  %s1806_s27 = scalar_lea.vmem (!%p321_p10), %s2237_s17, 1024 }
  0x1a   : > { %413 = vperm.xlu0 (!%p321_p10), %1788, %v399_v12   ;;  %423 = vperm.xlu1 (!%p321_p10), %1789, %v401_v13   ;;  %v711_v33 = vld [vmem:[%s2325_s4 + $0x30] sm:$0xff] (!%p321_p10)  ;;  %v713_v35 = vld [vmem:[%s2325_s4 + $0x40] sm:$0xff] (!%p321_p10)  ;;  %v714_v36 = vld [vmem:[%s2325_s4 + $0x48] sm:$0xff] (!%p321_p10)  ;;  %p1807_p12 = scmp.ne.s32.totalorder (!%p321_p10), %s2237_s17, %s1806_s27 }
  0x1b   : > { %s367_s24 = scalar_select %p366_p11, %s1908_s14, 1  ;;  %v1795_v37 = vld [vmem:[%s2322_s1 + $0x18] sm:$0xff]   ;;  %v715_v38 = vld [vmem:[%s2325_s4 + $0x50] sm:$0xff]  ;;  %v717_v40 = vld [vmem:[%s2325_s4 + $0x60] sm:$0xff] }
  0x1c   : > { %v716_v39 = vld [vmem:[%s2325_s4 + $0x58] sm:$0xff]  ;;  %v718_v41 = vld [vmem:[%s2325_s4 + $0x68] sm:$0xff]  ;;  %v719_v42 = vld [vmem:[%s2325_s4 + $0x70] sm:$0xff]  ;;  %p1808_p13 = pnand %p1807_p12, %p2018_p4 }
  0x1d   : > { %s1712_s25 = sshll.u32 %s367_s24, 4  ;;  %v720_v43 = vld [vmem:[%s2325_s4 + $0x78] sm:$0xff]  ;;  %v1326_v44 = vld [vmem:[%s2327_s6] sm:$0xff]  ;;  %v1327_v45 = vld [vmem:[%s2327_s6 + $0x8] sm:$0xff]  ;;  %s2235_s24 = scalar_lea.hbm %s2329_s8, %s1721_s7 }
  0x1e   : > { %s373_s28 = scalar_lea.vmem %s2334_s0, %s1712_s25  ;;  %428 = vperm.xlu0 %1788, %v402_v20   ;;  %433 = vperm.xlu1 %1789, %v403_v21   ;;  %v1328_v46 = vld [vmem:[%s2327_s6 + $0x10] sm:$0xff]  ;;  %v1329_v47 = vld [vmem:[%s2327_s6 + $0x18] sm:$0xff]  ;;  %s2239_s25 = sld [smem:[#allocation2]] }
  0x1f   : > { %v378_v4 = vld [vmem:[%s373_s28] sm:$0x77]  ;;  %v379_v6 = vld [vmem:[%s373_s28 + $0x8] sm:$0x77]  ;;  %p1809_p0 = pneg %p1808_p13  ;;  %s1920_s28 = smov [#allocation3]  }
  0x20   : > { %v382_v8 = vcombine.high %v378_v4, %v378_v4  ;;  %v383_v9 = vcombine.high %v379_v6, %v379_v6  ;;  %v386_v10 = vpack.c.bf16 %v378_v4, %v378_v4  ;;  %v388_v11 = vpack.c.bf16 %v379_v6, %v379_v6  ;;  %s1810_s30 = sshll.u32 %s1920_s28, 4  ;;  %s1811_s30 = int_to_ptr.vmem [resolvable:$false] %s1810_s30 }
  0x21   : > { %s1812_s7 = scalar_lea.vmem %s1811_s30, 2048  ;;  %p1813_p1 = scmp.lt.s32.totalorder %s2237_s17, %s1811_s30 }
  0x22   : > { %v387_v14 = vpack.c.bf16 %v382_v8, %v382_v8  ;;  %v389_v15 = vpack.c.bf16 %v383_v9, %v383_v9  ;;  %v484_v16 = vand.u32 %v482_v5, %v386_v10  ;;  %v490_v17 = vand.u32 %v482_v5, %v388_v11  ;;  %438 = vperm.xlu0 %1788, %v404_v23   ;;  %p1814_p2 = scmp.lt.s32.totalorder %s1812_s7, %s1806_s27 }
  0x23   : > { %443 = vperm.xlu1 %1789, %v405_v24  }
  0x24   : > { %v487_v18 = vand.u32 %v482_v5, %v387_v14  ;;  %v493_v19 = vand.u32 %v482_v5, %v389_v15  ;;  %p1815_p3 = por %p1814_p2, %p1813_p1 }
  0x26   : > { %495 = vmatprep.subr.bf16.mxu0 %v487_v18  ;;  %568 = vmatprep.subr.bf16.mxu1 %v493_v19  ;;  %p1816_p5 = pnand %p1815_p3, %p1809_p0 }
  0x27   : > { %496 = vmatpush1.bf16.msra.mxu0 %v484_v16  ;;  %569 = vmatpush1.bf16.msra.mxu1 %v490_v17 }
  0x28   : > { %723 = vperm.xlu0 %1788, %v705_v25   ;;  %728 = vperm.xlu1 %1789, %v706_v26  }
  0x2a   : > { %1662 = vmatmul.mubr.msk.bf16.vlgmr.msra.gmra.mrb[0].mxu0 %vm466_vm2, %v1792_v22  ;;  %1666 = vmatmul.mubr.msk.bf16.vlgmr.msra.gmra.mrb[0].mxu1 %vm466_vm2, %v1792_v22 }
  0x2b   : > { %537 = vmatprep.mubr.bf16.mxu0 %v1918_v0  ;;  %610 = vmatprep.mubr.bf16.mxu1 %v1918_v0 }
  0x2c   : > { %733 = vperm.xlu0 %1788, %v707_v28   ;;  %738 = vperm.xlu1 %1789, %v708_v29  }
  0x30   : > { %743 = vperm.xlu0 %1788, %v709_v30   ;;  %748 = vperm.xlu1 %1789, %v710_v31  }
  0x32   : > { %1663 = vmatmul.mubr.msk.bf16.gmra.mrb[4].mxu0 %vm466_vm2, %v1793_v27  ;;  %1667 = vmatmul.mubr.msk.bf16.gmra.mrb[4].mxu1 %vm466_vm2, %v1793_v27 }
  0x33   : > { %547 = vmatprep.mubr.bf16.mxu0 %v1918_v0  ;;  %620 = vmatprep.mubr.bf16.mxu1 %v1918_v0 }
  0x34   : > { %753 = vperm.xlu0 %1788, %v711_v33   ;;  %758 = vperm.xlu1 %1789, %v712_v34  }
  0x38   : > { %763 = vperm.xlu0 %1788, %v713_v35   ;;  %768 = vperm.xlu1 %1789, %v714_v36  }
  0x3a   : > { %1664 = vmatmul.mubr.msk.bf16.gmra.mrb[8].mxu0 %vm466_vm2, %v1794_v32  ;;  %1668 = vmatmul.mubr.msk.bf16.gmra.mrb[8].mxu1 %vm466_vm2, %v1794_v32 }
  0x3b   : > { %557 = vmatprep.mubr.bf16.mxu0 %v1918_v0  ;;  %630 = vmatprep.mubr.bf16.mxu1 %v1918_v0 }
  0x3c   : > { %773 = vperm.xlu0 %1788, %v715_v38   ;;  %778 = vperm.xlu1 %1789, %v716_v39  }
  0x40   : > { %783 = vperm.xlu0 %1788, %v717_v40   ;;  %788 = vperm.xlu1 %1789, %v718_v41  }
  0x42   : > { %1665 = vmatmul.mubr.msk.bf16.gmra.mrb[12].mxu0 %vm466_vm2, %v1795_v37  ;;  %1669 = vmatmul.mubr.msk.bf16.gmra.mrb[12].mxu1 %vm466_vm2, %v1795_v37 }
  0x43   : > { %898 = vmatprep.mubr.bf16.mxu0 %v1918_v0  ;;  %1011 = vmatprep.mubr.bf16.mxu1 %v1918_v0 }
  0x44   : > { %793 = vperm.xlu0 %1788, %v719_v42   ;;  %798 = vperm.xlu1 %1789, %v720_v43  }
  0x48   : > { %1332 = vperm.xlu0 %1788, %v1326_v44   ;;  %1337 = vperm.xlu1 %1789, %v1327_v45  }
  0x4c   : > { %1342 = vperm.xlu0 %1788, %v1328_v46   ;;  %1347 = vperm.xlu1 %1789, %v1329_v47  }
  0x95   : > { %v409_v48 = vpop.permute.xlu0 %408  ;;  %v419_v50 = vpop.permute.xlu1 %418 }
  0x99   : > { %v414_v49 = vpop.permute.xlu0 %413  ;;  %v424_v12 = vpop.permute.xlu1 %423 }
  0x9d   : > { %v429_v41 = vpop.permute.xlu0 %428  ;;  %v434_v42 = vpop.permute.xlu1 %433 }
  0xfd   : > { %v529_v51 = vpop.f32.mrb[0].mxu0  ;;  %v602_v52 = vpop.f32.mrb[0].mxu1 }
  0xfe   : > { %v530_v53 = vadd.f32 %v529_v51, %v409_v48  ;;  %v603_v54 = vadd.f32 %v602_v52, %v409_v48  ;;  %v531_v55 = vpop.f32.mrb[1].mxu0  ;;  %v604_v56 = vpop.f32.mrb[1].mxu1 }
  0xff   : > { %v532_v57 = vadd.f32 %v531_v55, %v409_v48  ;;  %v605_v58 = vadd.f32 %v604_v56, %v409_v48  ;;  %v533_v59 = vpop.f32.mrb[2].mxu0  ;;  %v606_v60 = vpop.f32.mrb[2].mxu1 }
 0x100   : > { %v534_v61 = vadd.f32 %v533_v59, %v414_v49  ;;  %v607_v62 = vadd.f32 %v606_v60, %v414_v49  ;;  %v535_v63 = vpop.f32.mrb[3].mxu0  ;;  %v608_v1 = vpop.f32.mrb[3].mxu1  ;;  %v641_v4 = vmax.f32 %v530_v53, 0.0  ;;  %v643_v5 = vmax.f32 %v603_v54, 0.0 }
 0x101   : > { %v536_v2 = vadd.f32 %v535_v63, %v414_v49  ;;  %v609_v3 = vadd.f32 %v608_v1, %v414_v49  ;;  %v642_v8 = vmax.f32 %v532_v57, 0.0  ;;  %v644_v9 = vmax.f32 %v605_v58, 0.0 }
 0x102   : > { %v645_v6 = vmax.f32 %v534_v61, 0.0  ;;  %v647_v7 = vmax.f32 %v607_v62, 0.0 }
 0x103   : > { %v646_v10 = vmax.f32 %v536_v2, 0.0  ;;  %v648_v11 = vmax.f32 %v609_v3, 0.0 }
 0x104   : > { %v689_v13 = vpack.c.bf16 %v645_v6, %v641_v4  ;;  %v691_v14 = vpack.c.bf16 %v647_v7, %v643_v5 }
 0x105   : > { %v690_v15 = vpack.c.bf16 %v646_v10, %v642_v8  ;;  %v692_v16 = vpack.c.bf16 %v648_v11, %v644_v9  ;;  %v539_v17 = vpop.f32.mrb[4].mxu0  ;;  %v612_v18 = vpop.f32.mrb[4].mxu1 }
 0x106   : > { %v540_v19 = vadd.f32 %v539_v17, %v419_v50  ;;  %v613_v20 = vadd.f32 %v612_v18, %v419_v50  ;;  %v541_v21 = vpop.f32.mrb[5].mxu0  ;;  %v614_v22 = vpop.f32.mrb[5].mxu1 }
 0x107   : > { %v542_v23 = vadd.f32 %v541_v21, %v419_v50  ;;  %v615_v24 = vadd.f32 %v614_v22, %v419_v50  ;;  %v543_v25 = vpop.f32.mrb[6].mxu0  ;;  %v616_v26 = vpop.f32.mrb[6].mxu1  ;;  %866 = vmatprep.subr.bf16.mxu0 %v690_v15  ;;  %979 = vmatprep.subr.bf16.mxu1 %v692_v16 }
 0x108   : > { %v544_v27 = vadd.f32 %v543_v25, %v424_v12  ;;  %v617_v28 = vadd.f32 %v616_v26, %v424_v12  ;;  %v545_v29 = vpop.f32.mrb[7].mxu0  ;;  %v618_v30 = vpop.f32.mrb[7].mxu1  ;;  %867 = vmatpush1.bf16.msra.mxu0 %v689_v13  ;;  %980 = vmatpush1.bf16.msra.mxu1 %v691_v14  ;;  %v649_v33 = vmax.f32 %v540_v19, 0.0  ;;  %v651_v34 = vmax.f32 %v613_v20, 0.0 }
 0x109   : > { %v546_v31 = vadd.f32 %v545_v29, %v424_v12  ;;  %v619_v32 = vadd.f32 %v618_v30, %v424_v12  ;;  %v650_v37 = vmax.f32 %v542_v23, 0.0  ;;  %v652_v38 = vmax.f32 %v615_v24, 0.0  ;;  %v439_v8 = vpop.permute.xlu0 %438  ;;  %v444_v9 = vpop.permute.xlu1 %443 }
 0x10a   : > { %v653_v35 = vmax.f32 %v544_v27, 0.0  ;;  %v655_v36 = vmax.f32 %v617_v28, 0.0 }
 0x10b   : > { %v654_v39 = vmax.f32 %v546_v31, 0.0  ;;  %v656_v40 = vmax.f32 %v619_v32, 0.0 }
 0x10c   : > { %v693_v43 = vpack.c.bf16 %v653_v35, %v649_v33  ;;  %v695_v44 = vpack.c.bf16 %v655_v36, %v651_v34 }
 0x10d   : > { %v694_v45 = vpack.c.bf16 %v654_v39, %v650_v37  ;;  %v696_v46 = vpack.c.bf16 %v656_v40, %v652_v38  ;;  %v549_v47 = vpop.f32.mrb[8].mxu0  ;;  %v622_v48 = vpop.f32.mrb[8].mxu1 }
 0x10e   : > { %v550_v49 = vadd.f32 %v549_v47, %v429_v41  ;;  %v623_v50 = vadd.f32 %v622_v48, %v429_v41  ;;  %v551_v51 = vpop.f32.mrb[9].mxu0  ;;  %v624_v52 = vpop.f32.mrb[9].mxu1  ;;  %v1801_v47 = vld [vmem:[%s2324_s3 + $0x28] sm:$0xff]   ;;  %v1802_v48 = vld [vmem:[%s2324_s3 + $0x30] sm:$0xff]  }
 0x10f   : > { %v552_v53 = vadd.f32 %v551_v51, %v429_v41  ;;  %v625_v54 = vadd.f32 %v624_v52, %v429_v41  ;;  %v553_v55 = vpop.f32.mrb[10].mxu0  ;;  %v626_v56 = vpop.f32.mrb[10].mxu1  ;;  %868 = vmatprep.subr.bf16.mxu0 %v694_v45  ;;  %981 = vmatprep.subr.bf16.mxu1 %v696_v46  ;;  %v1799_v45 = vld [vmem:[%s2324_s3 + $0x18] sm:$0xff]   ;;  %v1800_v46 = vld [vmem:[%s2324_s3 + $0x20] sm:$0xff]  }
 0x110   : > { %v554_v57 = vadd.f32 %v553_v55, %v434_v42  ;;  %v627_v58 = vadd.f32 %v626_v56, %v434_v42  ;;  %v555_v59 = vpop.f32.mrb[11].mxu0  ;;  %v628_v60 = vpop.f32.mrb[11].mxu1  ;;  %869 = vmatpush1.bf16.msra.mxu0 %v693_v43  ;;  %982 = vmatpush1.bf16.msra.mxu1 %v695_v44  ;;  %v657_v63 = vmax.f32 %v550_v49, 0.0  ;;  %v659_v1 = vmax.f32 %v623_v50, 0.0  ;;  %v1797_v43 = vld [vmem:[%s2324_s3 + $0x8] sm:$0xff]   ;;  %v1798_v44 = vld [vmem:[%s2324_s3 + $0x10] sm:$0xff]  }
 0x111   : > { %v556_v61 = vadd.f32 %v555_v59, %v434_v42  ;;  %v629_v62 = vadd.f32 %v628_v60, %v434_v42  ;;  %v658_v4 = vmax.f32 %v552_v53, 0.0  ;;  %v660_v5 = vmax.f32 %v625_v54, 0.0  ;;  %v1796_v42 = vld [vmem:[%s2324_s3] sm:$0xff]   ;;  %v1803_v49 = vld [vmem:[%s2324_s3 + $0x38] sm:$0xff]   ;;  %v724_v50 = vpop.permute.xlu0 %723  ;;  %v729_v51 = vpop.permute.xlu1 %728 }
 0x112   : > { %v661_v2 = vmax.f32 %v554_v57, 0.0  ;;  %v663_v3 = vmax.f32 %v627_v58, 0.0 }
 0x113   : > { %v662_v6 = vmax.f32 %v556_v61, 0.0  ;;  %v664_v7 = vmax.f32 %v629_v62, 0.0 }
 0x114   : > { %v697_v10 = vpack.c.bf16 %v661_v2, %v657_v63  ;;  %v699_v11 = vpack.c.bf16 %v663_v3, %v659_v1 }
 0x115   : > { %v698_v12 = vpack.c.bf16 %v662_v6, %v658_v4  ;;  %v700_v13 = vpack.c.bf16 %v664_v7, %v660_v5  ;;  %v559_v14 = vpop.f32.mrb[12].mxu0  ;;  %v632_v15 = vpop.f32.mrb[12].mxu1 }
 0x116   : > { %v560_v16 = vadd.f32 %v559_v14, %v439_v8  ;;  %v633_v17 = vadd.f32 %v632_v15, %v439_v8  ;;  %v561_v18 = vpop.f32.mrb[13].mxu0  ;;  %v634_v19 = vpop.f32.mrb[13].mxu1 }
 0x117   : > { %v562_v20 = vadd.f32 %v561_v18, %v439_v8  ;;  %v635_v21 = vadd.f32 %v634_v19, %v439_v8  ;;  %v563_v22 = vpop.f32.mrb[14].mxu0  ;;  %v636_v23 = vpop.f32.mrb[14].mxu1  ;;  %870 = vmatprep.subr.bf16.mxu0 %v698_v12  ;;  %983 = vmatprep.subr.bf16.mxu1 %v700_v13 }
 0x118   : > { %v564_v24 = vadd.f32 %v563_v22, %v444_v9  ;;  %v637_v25 = vadd.f32 %v636_v23, %v444_v9  ;;  %v565_v26 = vpop.f32.mrb[15].mxu0  ;;  %v638_v27 = vpop.f32.mrb[15].mxu1  ;;  %871 = vmatpush1.bf16.msra.mxu0 %v697_v10  ;;  %984 = vmatpush1.bf16.msra.mxu1 %v699_v11  ;;  %v665_v30 = vmax.f32 %v560_v16, 0.0  ;;  %v667_v31 = vmax.f32 %v633_v17, 0.0 }
 0x119   : > { %v566_v28 = vadd.f32 %v565_v26, %v444_v9  ;;  %v639_v29 = vadd.f32 %v638_v27, %v444_v9  ;;  %v666_v34 = vmax.f32 %v562_v20, 0.0  ;;  %v668_v35 = vmax.f32 %v635_v21, 0.0  ;;  %v734_v13 = vpop.permute.xlu0 %733  ;;  %v739_v14 = vpop.permute.xlu1 %738 }
 0x11a   : > { %v669_v32 = vmax.f32 %v564_v24, 0.0  ;;  %v671_v33 = vmax.f32 %v637_v25, 0.0 }
 0x11b   : > { %v670_v36 = vmax.f32 %v566_v28, 0.0  ;;  %v672_v37 = vmax.f32 %v639_v29, 0.0 }
 0x11c   : > { %v701_v38 = vpack.c.bf16 %v669_v32, %v665_v30  ;;  %v703_v39 = vpack.c.bf16 %v671_v33, %v667_v31 }
 0x11d   : > { %v702_v40 = vpack.c.bf16 %v670_v36, %v666_v34  ;;  %v704_v41 = vpack.c.bf16 %v672_v37, %v668_v35 }
 0x11f   : > { %872 = vmatprep.subr.bf16.mxu0 %v702_v40  ;;  %985 = vmatprep.subr.bf16.mxu1 %v704_v41 }
 0x120   : > { %873 = vmatpush1.bf16.msra.mxu0 %v701_v38  ;;  %986 = vmatpush1.bf16.msra.mxu1 %v703_v39 }
 0x123   : > { %1678 = vmatmul.mubr.msk.bf16.vlgmr.msra.gmra.mrb[16].mxu0 %vm841_vm3, %v1796_v42  ;;  %1686 = vmatmul.mubr.msk.bf16.vlgmr.msra.gmra.mrb[16].mxu1 %vm841_vm3, %v1796_v42 }
 0x124   : > { %908 = vmatprep.mubr.bf16.mxu0 %v1918_v0  ;;  %1021 = vmatprep.mubr.bf16.mxu1 %v1918_v0 }
 0x12b   : > { %1679 = vmatmul.mubr.msk.bf16.gmra.mrb[20].mxu0 %vm841_vm3, %v1797_v43  ;;  %1687 = vmatmul.mubr.msk.bf16.gmra.mrb[20].mxu1 %vm841_vm3, %v1797_v43  ;;  %v744_v43 = vpop.permute.xlu0 %743 }
 0x12c   : > { %918 = vmatprep.mubr.bf16.mxu0 %v1918_v0  ;;  %1031 = vmatprep.mubr.bf16.mxu1 %v1918_v0 }
 0x133   : > { %1680 = vmatmul.mubr.msk.bf16.gmra.mrb[24].mxu0 %vm841_vm3, %v1798_v44  ;;  %1688 = vmatmul.mubr.msk.bf16.gmra.mrb[24].mxu1 %vm841_vm3, %v1798_v44  ;;  %v749_v44 = vpop.permute.xlu1 %748 }
 0x134   : > { %928 = vmatprep.mubr.bf16.mxu0 %v1918_v0  ;;  %1041 = vmatprep.mubr.bf16.mxu1 %v1918_v0 }
 0x13b   : > { %1681 = vmatmul.mubr.msk.bf16.gmra.mrb[28].mxu0 %vm841_vm3, %v1799_v45  ;;  %1689 = vmatmul.mubr.msk.bf16.gmra.mrb[28].mxu1 %vm841_vm3, %v1799_v45 }
 0x13c   : > { %938 = vmatprep.mubr.bf16.mxu0 %v1918_v0  ;;  %1051 = vmatprep.mubr.bf16.mxu1 %v1918_v0 }
 0x143   : > { %1682 = vmatmul.mubr.msk.bf16.gmra.mrb[32].mxu0 %vm841_vm3, %v1800_v46  ;;  %1690 = vmatmul.mubr.msk.bf16.gmra.mrb[32].mxu1 %vm841_vm3, %v1800_v46 }
 0x144   : > { %948 = vmatprep.mubr.bf16.mxu0 %v1918_v0  ;;  %1061 = vmatprep.mubr.bf16.mxu1 %v1918_v0 }
 0x14b   : > { %1683 = vmatmul.mubr.msk.bf16.gmra.mrb[36].mxu0 %vm841_vm3, %v1801_v47  ;;  %1691 = vmatmul.mubr.msk.bf16.gmra.mrb[36].mxu1 %vm841_vm3, %v1801_v47 }
 0x14c   : > { %958 = vmatprep.mubr.bf16.mxu0 %v1918_v0  ;;  %1071 = vmatprep.mubr.bf16.mxu1 %v1918_v0 }
 0x153   : > { %1684 = vmatmul.mubr.msk.bf16.gmra.mrb[40].mxu0 %vm841_vm3, %v1802_v48  ;;  %1692 = vmatmul.mubr.msk.bf16.gmra.mrb[40].mxu1 %vm841_vm3, %v1802_v48 }
 0x154   : > { %968 = vmatprep.mubr.bf16.mxu0 %v1918_v0  ;;  %1081 = vmatprep.mubr.bf16.mxu1 %v1918_v0 }
 0x15b   : > { %1685 = vmatmul.mubr.msk.bf16.gmra.mrb[44].mxu0 %vm841_vm3, %v1803_v49  ;;  %1693 = vmatmul.mubr.msk.bf16.gmra.mrb[44].mxu1 %vm841_vm3, %v1803_v49 }
 0x15c   : > { %1236 = vmatprep.mubr.bf16.mxu0 %v1918_v0  ;;  %1289 = vmatprep.mubr.bf16.mxu1 %v1918_v0 }
 0x1f6   : > { %v900_v52 = vpop.f32.mrb[16].mxu0  ;;  %v1013_v53 = vpop.f32.mrb[16].mxu1 }
 0x1f7   : > { %v901_v54 = vadd.f32 %v900_v52, %v724_v50  ;;  %v1014_v55 = vadd.f32 %v1013_v53, %v724_v50  ;;  %v902_v56 = vpop.f32.mrb[17].mxu0  ;;  %v1015_v57 = vpop.f32.mrb[17].mxu1 }
 0x1f8   : > { %v903_v58 = vadd.f32 %v902_v56, %v724_v50  ;;  %v1016_v59 = vadd.f32 %v1015_v57, %v724_v50  ;;  %v904_v60 = vpop.f32.mrb[18].mxu0  ;;  %v1017_v61 = vpop.f32.mrb[18].mxu1 }
 0x1f9   : > { %v905_v62 = vadd.f32 %v904_v60, %v729_v51  ;;  %v1018_v63 = vadd.f32 %v1017_v61, %v729_v51  ;;  %v906_v1 = vpop.f32.mrb[19].mxu0  ;;  %v1019_v2 = vpop.f32.mrb[19].mxu1  ;;  %v1092_v5 = vmax.f32 %v901_v54, 0.0  ;;  %v1094_v6 = vmax.f32 %v1014_v55, 0.0 }
 0x1fa   : > { %v907_v3 = vadd.f32 %v906_v1, %v729_v51  ;;  %v1020_v4 = vadd.f32 %v1019_v2, %v729_v51  ;;  %v1093_v9 = vmax.f32 %v903_v58, 0.0  ;;  %v1095_v10 = vmax.f32 %v1016_v59, 0.0 }
 0x1fb   : > { %v1096_v7 = vmax.f32 %v905_v62, 0.0  ;;  %v1098_v8 = vmax.f32 %v1018_v63, 0.0 }
 0x1fc   : > { %v1097_v11 = vmax.f32 %v907_v3, 0.0  ;;  %v1099_v12 = vmax.f32 %v1020_v4, 0.0 }
 0x1fd   : > { %v1160_v15 = vpack.c.bf16 %v1096_v7, %v1092_v5  ;;  %v1162_v16 = vpack.c.bf16 %v1098_v8, %v1094_v6 }
 0x1fe   : > { %v1161_v17 = vpack.c.bf16 %v1097_v11, %v1093_v9  ;;  %v1163_v18 = vpack.c.bf16 %v1099_v12, %v1095_v10  ;;  %v910_v19 = vpop.f32.mrb[20].mxu0  ;;  %v1023_v20 = vpop.f32.mrb[20].mxu1 }
 0x1ff   : > { %v911_v21 = vadd.f32 %v910_v19, %v734_v13  ;;  %v1024_v22 = vadd.f32 %v1023_v20, %v734_v13  ;;  %v912_v23 = vpop.f32.mrb[21].mxu0  ;;  %v1025_v24 = vpop.f32.mrb[21].mxu1 }
 0x200   : > { %v913_v25 = vadd.f32 %v912_v23, %v734_v13  ;;  %v1026_v26 = vadd.f32 %v1025_v24, %v734_v13  ;;  %v914_v27 = vpop.f32.mrb[22].mxu0  ;;  %v1027_v28 = vpop.f32.mrb[22].mxu1  ;;  %1204 = vmatprep.subr.bf16.mxu0 %v1161_v17  ;;  %1257 = vmatprep.subr.bf16.mxu1 %v1163_v18 }
 0x201   : > { %v915_v29 = vadd.f32 %v914_v27, %v739_v14  ;;  %v1028_v30 = vadd.f32 %v1027_v28, %v739_v14  ;;  %v916_v31 = vpop.f32.mrb[23].mxu0  ;;  %v1029_v32 = vpop.f32.mrb[23].mxu1  ;;  %1205 = vmatpush1.bf16.msra.mxu0 %v1160_v15  ;;  %1258 = vmatpush1.bf16.msra.mxu1 %v1162_v16  ;;  %v1100_v35 = vmax.f32 %v911_v21, 0.0  ;;  %v1102_v36 = vmax.f32 %v1024_v22, 0.0 }
 0x202   : > { %v917_v33 = vadd.f32 %v916_v31, %v739_v14  ;;  %v1030_v34 = vadd.f32 %v1029_v32, %v739_v14  ;;  %v1101_v39 = vmax.f32 %v913_v25, 0.0  ;;  %v1103_v40 = vmax.f32 %v1026_v26, 0.0  ;;  %v754_v10 = vpop.permute.xlu0 %753  ;;  %v759_v11 = vpop.permute.xlu1 %758 }
 0x203   : > { %v1104_v37 = vmax.f32 %v915_v29, 0.0  ;;  %v1106_v38 = vmax.f32 %v1028_v30, 0.0 }
 0x204   : > { %v1105_v41 = vmax.f32 %v917_v33, 0.0  ;;  %v1107_v42 = vmax.f32 %v1030_v34, 0.0 }
 0x205   : > { %v1164_v45 = vpack.c.bf16 %v1104_v37, %v1100_v35  ;;  %v1166_v46 = vpack.c.bf16 %v1106_v38, %v1102_v36 }
 0x206   : > { %v1165_v47 = vpack.c.bf16 %v1105_v41, %v1101_v39  ;;  %v1167_v48 = vpack.c.bf16 %v1107_v42, %v1103_v40  ;;  %v920_v49 = vpop.f32.mrb[24].mxu0  ;;  %v1033_v50 = vpop.f32.mrb[24].mxu1 }
 0x207   : > { %v921_v51 = vadd.f32 %v920_v49, %v744_v43  ;;  %v1034_v52 = vadd.f32 %v1033_v50, %v744_v43  ;;  %v922_v53 = vpop.f32.mrb[25].mxu0  ;;  %v1035_v54 = vpop.f32.mrb[25].mxu1 }
 0x208   : > { %v923_v55 = vadd.f32 %v922_v53, %v744_v43  ;;  %v1036_v56 = vadd.f32 %v1035_v54, %v744_v43  ;;  %v924_v57 = vpop.f32.mrb[26].mxu0  ;;  %v1037_v58 = vpop.f32.mrb[26].mxu1  ;;  %1206 = vmatprep.subr.bf16.mxu0 %v1165_v47  ;;  %1259 = vmatprep.subr.bf16.mxu1 %v1167_v48 }
 0x209   : > { %v925_v59 = vadd.f32 %v924_v57, %v749_v44  ;;  %v1038_v60 = vadd.f32 %v1037_v58, %v749_v44  ;;  %v926_v61 = vpop.f32.mrb[27].mxu0  ;;  %v1039_v62 = vpop.f32.mrb[27].mxu1  ;;  %1207 = vmatpush1.bf16.msra.mxu0 %v1164_v45  ;;  %1260 = vmatpush1.bf16.msra.mxu1 %v1166_v46  ;;  %v1108_v2 = vmax.f32 %v921_v51, 0.0  ;;  %v1110_v3 = vmax.f32 %v1034_v52, 0.0 }
 0x20a   : > { %v927_v63 = vadd.f32 %v926_v61, %v749_v44  ;;  %v1040_v1 = vadd.f32 %v1039_v62, %v749_v44  ;;  %v1109_v6 = vmax.f32 %v923_v55, 0.0  ;;  %v1111_v7 = vmax.f32 %v1036_v56, 0.0  ;;  %v764_v40 = vpop.permute.xlu0 %763  ;;  %v769_v41 = vpop.permute.xlu1 %768 }
 0x20b   : > { %v1112_v4 = vmax.f32 %v925_v59, 0.0  ;;  %v1114_v5 = vmax.f32 %v1038_v60, 0.0 }
 0x20c   : > { %v1113_v8 = vmax.f32 %v927_v63, 0.0  ;;  %v1115_v9 = vmax.f32 %v1040_v1, 0.0 }
 0x20d   : > { %v1168_v12 = vpack.c.bf16 %v1112_v4, %v1108_v2  ;;  %v1170_v13 = vpack.c.bf16 %v1114_v5, %v1110_v3 }
 0x20e   : > { %v1169_v14 = vpack.c.bf16 %v1113_v8, %v1109_v6  ;;  %v1171_v15 = vpack.c.bf16 %v1115_v9, %v1111_v7  ;;  %v930_v16 = vpop.f32.mrb[28].mxu0  ;;  %v1043_v17 = vpop.f32.mrb[28].mxu1 }
 0x20f   : > { %v931_v18 = vadd.f32 %v930_v16, %v754_v10  ;;  %v1044_v19 = vadd.f32 %v1043_v17, %v754_v10  ;;  %v932_v20 = vpop.f32.mrb[29].mxu0  ;;  %v1045_v21 = vpop.f32.mrb[29].mxu1 }
 0x210   : > { %v933_v22 = vadd.f32 %v932_v20, %v754_v10  ;;  %v1046_v23 = vadd.f32 %v1045_v21, %v754_v10  ;;  %v934_v24 = vpop.f32.mrb[30].mxu0  ;;  %v1047_v25 = vpop.f32.mrb[30].mxu1  ;;  %1208 = vmatprep.subr.bf16.mxu0 %v1169_v14  ;;  %1261 = vmatprep.subr.bf16.mxu1 %v1171_v15 }
 0x211   : > { %v935_v26 = vadd.f32 %v934_v24, %v759_v11  ;;  %v1048_v27 = vadd.f32 %v1047_v25, %v759_v11  ;;  %v936_v28 = vpop.f32.mrb[31].mxu0  ;;  %v1049_v29 = vpop.f32.mrb[31].mxu1  ;;  %1209 = vmatpush1.bf16.msra.mxu0 %v1168_v12  ;;  %1262 = vmatpush1.bf16.msra.mxu1 %v1170_v13  ;;  %v1116_v32 = vmax.f32 %v931_v18, 0.0  ;;  %v1118_v33 = vmax.f32 %v1044_v19, 0.0 }
 0x212   : > { %v937_v30 = vadd.f32 %v936_v28, %v759_v11  ;;  %v1050_v31 = vadd.f32 %v1049_v29, %v759_v11  ;;  %v1117_v36 = vmax.f32 %v933_v22, 0.0  ;;  %v1119_v37 = vmax.f32 %v1046_v23, 0.0  ;;  %v774_v7 = vpop.permute.xlu0 %773  ;;  %v779_v8 = vpop.permute.xlu1 %778 }
 0x213   : > { %v1120_v34 = vmax.f32 %v935_v26, 0.0  ;;  %v1122_v35 = vmax.f32 %v1048_v27, 0.0 }
 0x214   : > { %v1121_v38 = vmax.f32 %v937_v30, 0.0  ;;  %v1123_v39 = vmax.f32 %v1050_v31, 0.0 }
 0x215   : > { %v1172_v42 = vpack.c.bf16 %v1120_v34, %v1116_v32  ;;  %v1174_v43 = vpack.c.bf16 %v1122_v35, %v1118_v33 }
 0x216   : > { %v1173_v44 = vpack.c.bf16 %v1121_v38, %v1117_v36  ;;  %v1175_v45 = vpack.c.bf16 %v1123_v39, %v1119_v37  ;;  %v940_v46 = vpop.f32.mrb[32].mxu0  ;;  %v1053_v47 = vpop.f32.mrb[32].mxu1 }
 0x217   : > { %v941_v48 = vadd.f32 %v940_v46, %v764_v40  ;;  %v1054_v49 = vadd.f32 %v1053_v47, %v764_v40  ;;  %v942_v50 = vpop.f32.mrb[33].mxu0  ;;  %v1055_v51 = vpop.f32.mrb[33].mxu1 }
 0x218   : > { %v943_v52 = vadd.f32 %v942_v50, %v764_v40  ;;  %v1056_v53 = vadd.f32 %v1055_v51, %v764_v40  ;;  %v944_v54 = vpop.f32.mrb[34].mxu0  ;;  %v1057_v55 = vpop.f32.mrb[34].mxu1  ;;  %1210 = vmatprep.subr.bf16.mxu0 %v1173_v44  ;;  %1263 = vmatprep.subr.bf16.mxu1 %v1175_v45 }
 0x219   : > { %v945_v56 = vadd.f32 %v944_v54, %v769_v41  ;;  %v1058_v57 = vadd.f32 %v1057_v55, %v769_v41  ;;  %v946_v58 = vpop.f32.mrb[35].mxu0  ;;  %v1059_v59 = vpop.f32.mrb[35].mxu1  ;;  %1211 = vmatpush1.bf16.msra.mxu0 %v1172_v42  ;;  %1264 = vmatpush1.bf16.msra.mxu1 %v1174_v43  ;;  %v1124_v62 = vmax.f32 %v941_v48, 0.0  ;;  %v1126_v63 = vmax.f32 %v1054_v49, 0.0 }
 0x21a   : > { %v947_v60 = vadd.f32 %v946_v58, %v769_v41  ;;  %v1060_v61 = vadd.f32 %v1059_v59, %v769_v41  ;;  %v1125_v3 = vmax.f32 %v943_v52, 0.0  ;;  %v1127_v4 = vmax.f32 %v1056_v53, 0.0  ;;  %v784_v37 = vpop.permute.xlu0 %783  ;;  %v789_v38 = vpop.permute.xlu1 %788 }
 0x21b   : > { %v1128_v1 = vmax.f32 %v945_v56, 0.0  ;;  %v1130_v2 = vmax.f32 %v1058_v57, 0.0 }
 0x21c   : > { %v1129_v5 = vmax.f32 %v947_v60, 0.0  ;;  %v1131_v6 = vmax.f32 %v1060_v61, 0.0 }
 0x21d   : > { %v1176_v9 = vpack.c.bf16 %v1128_v1, %v1124_v62  ;;  %v1178_v10 = vpack.c.bf16 %v1130_v2, %v1126_v63 }
 0x21e   : > { %v1177_v11 = vpack.c.bf16 %v1129_v5, %v1125_v3  ;;  %v1179_v12 = vpack.c.bf16 %v1131_v6, %v1127_v4  ;;  %v950_v13 = vpop.f32.mrb[36].mxu0  ;;  %v1063_v14 = vpop.f32.mrb[36].mxu1 }
 0x21f   : > { %v951_v15 = vadd.f32 %v950_v13, %v774_v7  ;;  %v1064_v16 = vadd.f32 %v1063_v14, %v774_v7  ;;  %v952_v17 = vpop.f32.mrb[37].mxu0  ;;  %v1065_v18 = vpop.f32.mrb[37].mxu1 }
 0x220   : > { %v953_v19 = vadd.f32 %v952_v17, %v774_v7  ;;  %v1066_v20 = vadd.f32 %v1065_v18, %v774_v7  ;;  %v954_v21 = vpop.f32.mrb[38].mxu0  ;;  %v1067_v22 = vpop.f32.mrb[38].mxu1  ;;  %1212 = vmatprep.subr.bf16.mxu0 %v1177_v11  ;;  %1265 = vmatprep.subr.bf16.mxu1 %v1179_v12 }
 0x221   : > { %v955_v23 = vadd.f32 %v954_v21, %v779_v8  ;;  %v1068_v24 = vadd.f32 %v1067_v22, %v779_v8  ;;  %v956_v25 = vpop.f32.mrb[39].mxu0  ;;  %v1069_v26 = vpop.f32.mrb[39].mxu1  ;;  %1213 = vmatpush1.bf16.msra.mxu0 %v1176_v9  ;;  %1266 = vmatpush1.bf16.msra.mxu1 %v1178_v10  ;;  %v1132_v29 = vmax.f32 %v951_v15, 0.0  ;;  %v1134_v30 = vmax.f32 %v1064_v16, 0.0 }
 0x222   : > { %v957_v27 = vadd.f32 %v956_v25, %v779_v8  ;;  %v1070_v28 = vadd.f32 %v1069_v26, %v779_v8  ;;  %v1133_v33 = vmax.f32 %v953_v19, 0.0  ;;  %v1135_v34 = vmax.f32 %v1066_v20, 0.0  ;;  %v794_v4 = vpop.permute.xlu0 %793  ;;  %v799_v5 = vpop.permute.xlu1 %798 }
 0x223   : > { %v1136_v31 = vmax.f32 %v955_v23, 0.0  ;;  %v1138_v32 = vmax.f32 %v1068_v24, 0.0 }
 0x224   : > { %v1137_v35 = vmax.f32 %v957_v27, 0.0  ;;  %v1139_v36 = vmax.f32 %v1070_v28, 0.0 }
 0x225   : > { %v1180_v39 = vpack.c.bf16 %v1136_v31, %v1132_v29  ;;  %v1182_v40 = vpack.c.bf16 %v1138_v32, %v1134_v30 }
 0x226   : > { %v1181_v41 = vpack.c.bf16 %v1137_v35, %v1133_v33  ;;  %v1183_v42 = vpack.c.bf16 %v1139_v36, %v1135_v34  ;;  %v960_v43 = vpop.f32.mrb[40].mxu0  ;;  %v1073_v44 = vpop.f32.mrb[40].mxu1 }
 0x227   : > { %v961_v45 = vadd.f32 %v960_v43, %v784_v37  ;;  %v1074_v46 = vadd.f32 %v1073_v44, %v784_v37  ;;  %v962_v47 = vpop.f32.mrb[41].mxu0  ;;  %v1075_v48 = vpop.f32.mrb[41].mxu1 }
 0x228   : > { %v963_v49 = vadd.f32 %v962_v47, %v784_v37  ;;  %v1076_v50 = vadd.f32 %v1075_v48, %v784_v37  ;;  %v964_v51 = vpop.f32.mrb[42].mxu0  ;;  %v1077_v52 = vpop.f32.mrb[42].mxu1  ;;  %1214 = vmatprep.subr.bf16.mxu0 %v1181_v41  ;;  %1267 = vmatprep.subr.bf16.mxu1 %v1183_v42 }
 0x229   : > { %v965_v53 = vadd.f32 %v964_v51, %v789_v38  ;;  %v1078_v54 = vadd.f32 %v1077_v52, %v789_v38  ;;  %v966_v55 = vpop.f32.mrb[43].mxu0  ;;  %v1079_v56 = vpop.f32.mrb[43].mxu1  ;;  %1215 = vmatpush1.bf16.msra.mxu0 %v1180_v39  ;;  %1268 = vmatpush1.bf16.msra.mxu1 %v1182_v40  ;;  %v1140_v59 = vmax.f32 %v961_v45, 0.0  ;;  %v1142_v60 = vmax.f32 %v1074_v46, 0.0  ;;  %v1805_v39 = vld [vmem:[%s2326_s5 + $0x8] sm:$0xff]  }
 0x22a   : > { %v967_v57 = vadd.f32 %v966_v55, %v789_v38  ;;  %v1080_v58 = vadd.f32 %v1079_v56, %v789_v38  ;;  %v1141_v63 = vmax.f32 %v963_v49, 0.0  ;;  %v1143_v1 = vmax.f32 %v1076_v50, 0.0  ;;  %v1804_v38 = vld [vmem:[%s2326_s5] sm:$0xff]   ;;  %v1333_v40 = vpop.permute.xlu0 %1332 }
 0x22b   : > { %v1144_v61 = vmax.f32 %v965_v53, 0.0  ;;  %v1146_v62 = vmax.f32 %v1078_v54, 0.0  ;;  %v1338_v54 = vpop.permute.xlu1 %1337 }
 0x22c   : > { %v1145_v2 = vmax.f32 %v967_v57, 0.0  ;;  %v1147_v3 = vmax.f32 %v1080_v58, 0.0 }
 0x22d   : > { %v1184_v6 = vpack.c.bf16 %v1144_v61, %v1140_v59  ;;  %v1186_v7 = vpack.c.bf16 %v1146_v62, %v1142_v60 }
 0x22e   : > { %v1185_v8 = vpack.c.bf16 %v1145_v2, %v1141_v63  ;;  %v1187_v9 = vpack.c.bf16 %v1147_v3, %v1143_v1  ;;  %v970_v10 = vpop.f32.mrb[44].mxu0  ;;  %v1083_v11 = vpop.f32.mrb[44].mxu1 }
 0x22f   : > { %v971_v12 = vadd.f32 %v970_v10, %v794_v4  ;;  %v1084_v13 = vadd.f32 %v1083_v11, %v794_v4  ;;  %v972_v14 = vpop.f32.mrb[45].mxu0  ;;  %v1085_v15 = vpop.f32.mrb[45].mxu1 }
 0x230   : > { %v973_v16 = vadd.f32 %v972_v14, %v794_v4  ;;  %v1086_v17 = vadd.f32 %v1085_v15, %v794_v4  ;;  %v974_v18 = vpop.f32.mrb[46].mxu0  ;;  %v1087_v19 = vpop.f32.mrb[46].mxu1  ;;  %1216 = vmatprep.subr.bf16.mxu0 %v1185_v8  ;;  %1269 = vmatprep.subr.bf16.mxu1 %v1187_v9 }
 0x231   : > { %v975_v20 = vadd.f32 %v974_v18, %v799_v5  ;;  %v1088_v21 = vadd.f32 %v1087_v19, %v799_v5  ;;  %v976_v22 = vpop.f32.mrb[47].mxu0  ;;  %v1089_v23 = vpop.f32.mrb[47].mxu1  ;;  %1217 = vmatpush1.bf16.msra.mxu0 %v1184_v6  ;;  %1270 = vmatpush1.bf16.msra.mxu1 %v1186_v7  ;;  %v1148_v26 = vmax.f32 %v971_v12, 0.0  ;;  %v1150_v27 = vmax.f32 %v1084_v13, 0.0 }
 0x232   : > { %v977_v24 = vadd.f32 %v976_v22, %v799_v5  ;;  %v1090_v25 = vadd.f32 %v1089_v23, %v799_v5  ;;  %v1149_v30 = vmax.f32 %v973_v16, 0.0  ;;  %v1151_v31 = vmax.f32 %v1086_v17, 0.0  ;;  %v1343_v1 = vpop.permute.xlu0 %1342 }
 0x233   : > { %v1152_v28 = vmax.f32 %v975_v20, 0.0  ;;  %v1154_v29 = vmax.f32 %v1088_v21, 0.0 }
 0x234   : > { %v1153_v32 = vmax.f32 %v977_v24, 0.0  ;;  %v1155_v33 = vmax.f32 %v1090_v25, 0.0 }
 0x235   : > { %v1188_v34 = vpack.c.bf16 %v1152_v28, %v1148_v26  ;;  %v1190_v35 = vpack.c.bf16 %v1154_v29, %v1150_v27  ;;  %v1348_v27 = vpop.permute.xlu1 %1347 }
 0x236   : > { %v1189_v36 = vpack.c.bf16 %v1153_v32, %v1149_v30  ;;  %v1191_v37 = vpack.c.bf16 %v1155_v33, %v1151_v31 }
 0x238   : > { %1218 = vmatprep.subr.bf16.mxu0 %v1189_v36  ;;  %1271 = vmatprep.subr.bf16.mxu1 %v1191_v37 }
 0x239   : > { %1219 = vmatpush1.bf16.msra.mxu0 %v1188_v34  ;;  %1272 = vmatpush1.bf16.msra.mxu1 %v1190_v35 }
 0x23c   : > { %1237 = vmatmul.mubr.bf16.vlgmr.msra.gmra.mrb[48].mxu0 %v1804_v38  ;;  %1290 = vmatmul.mubr.bf16.vlgmr.msra.gmra.mrb[48].mxu1 %v1804_v38 }
 0x23d   : > { %1246 = vmatprep.mubr.bf16.mxu0 %v1918_v0  ;;  %1299 = vmatprep.mubr.bf16.mxu1 %v1918_v0 }
 0x244   : > { %1247 = vmatmul.mubr.bf16.gmra.mrb[52].mxu0 %v1805_v39  ;;  %1300 = vmatmul.mubr.bf16.gmra.mrb[52].mxu1 %v1805_v39 }
 0x30f   : > { %v1238_v41 = vpop.f32.mrb[48].mxu0  ;;  %v1291_v42 = vpop.f32.mrb[48].mxu1 }
 0x310   : > { %v1310_v43 = vmax.f32 %v1238_v41, 0.0  ;;  %v1312_v44 = vmax.f32 %v1291_v42, 0.0  ;;  %v1240_v45 = vpop.f32.mrb[49].mxu0  ;;  %v1293_v46 = vpop.f32.mrb[49].mxu1 }
 0x311   : > { %v1311_v47 = vmax.f32 %v1240_v45, 0.0  ;;  %v1313_v48 = vmax.f32 %v1293_v46, 0.0  ;;  %v1242_v0 = vpop.f32.mrb[50].mxu0  ;;  %v1295_v49 = vpop.f32.mrb[50].mxu1 }
 0x312   : > { %v1314_v50 = vmax.f32 %v1242_v0, 0.0  ;;  %v1316_v51 = vmax.f32 %v1295_v49, 0.0  ;;  %v1244_v52 = vpop.f32.mrb[51].mxu0  ;;  %v1297_v53 = vpop.f32.mrb[51].mxu1  ;;  %v1350_v55 = vmul.f32 %v1333_v40, %v1310_v43  ;;  %v1352_v56 = vmul.f32 %v1333_v40, %v1312_v44 }
 0x313   : > { %v1713_v57 = vpack.c.bf16 %v1311_v47, %v1310_v43  ;;  %v1714_v58 = vpack.c.bf16 %v1313_v48, %v1312_v44  ;;  %v1315_v61 = vmax.f32 %v1244_v52, 0.0  ;;  %v1317_v62 = vmax.f32 %v1297_v53, 0.0 }
 0x314   : > { %v1354_v59 = vmul.f32 %v1338_v54, %v1314_v50  ;;  %v1356_v60 = vmul.f32 %v1338_v54, %v1316_v51  ;;  %v1351_v63 = vmul.f32 %v1333_v40, %v1311_v47  ;;  %v1353_v6 = vmul.f32 %v1333_v40, %v1313_v48 }
 0x315   : > { %1456 = vst [vmem:[%s2222_s10] sm:$0xff] %v1713_v57  ;;  %1457 = vst [vmem:[%s2222_s10 + $0x8] sm:$0xff] %v1714_v58  ;;  %v1355_v4 = vmul.f32 %v1338_v54, %v1315_v61  ;;  %v1715_v5 = vpack.c.bf16 %v1315_v61, %v1314_v50  ;;  %v1357_v7 = vmul.f32 %v1338_v54, %v1317_v62 }
 0x316   : > { %v1366_v2 = vadd.f32 %v1354_v59, %v1350_v55  ;;  %v1384_v3 = vadd.f32 %v1356_v60, %v1352_v56  ;;  %v1716_v8 = vpack.c.bf16 %v1317_v62, %v1316_v51 }
 0x317   : > { %v1248_v9 = vpop.f32.mrb[52].mxu0  ;;  %v1301_v10 = vpop.f32.mrb[52].mxu1  ;;  %v1375_v11 = vadd.f32 %v1355_v4, %v1351_v63  ;;  %1458 = vst [vmem:[%s2222_s10 + $0x10] sm:$0xff] %v1715_v5  ;;  %v1393_v16 = vadd.f32 %v1357_v7, %v1353_v6 }
 0x318   : > { %v1318_v12 = vmax.f32 %v1248_v9, 0.0  ;;  %v1320_v13 = vmax.f32 %v1301_v10, 0.0  ;;  %v1250_v14 = vpop.f32.mrb[53].mxu0  ;;  %v1303_v15 = vpop.f32.mrb[53].mxu1  ;;  %1459 = vst [vmem:[%s2222_s10 + $0x18] sm:$0xff] %v1716_v8 }
 0x319   : > { %v1319_v17 = vmax.f32 %v1250_v14, 0.0  ;;  %v1321_v18 = vmax.f32 %v1303_v15, 0.0  ;;  %v1252_v19 = vpop.f32.mrb[54].mxu0  ;;  %v1305_v20 = vpop.f32.mrb[54].mxu1 }
 0x31a   : > { %v1358_v21 = vmul.f32 %v1343_v1, %v1318_v12  ;;  %v1360_v22 = vmul.f32 %v1343_v1, %v1320_v13  ;;  %v1322_v23 = vmax.f32 %v1252_v19, 0.0  ;;  %v1324_v24 = vmax.f32 %v1305_v20, 0.0  ;;  %v1254_v25 = vpop.f32.mrb[55].mxu0  ;;  %v1307_v26 = vpop.f32.mrb[55].mxu1 }
 0x31b   : > { %v1359_v28 = vmul.f32 %v1343_v1, %v1319_v17  ;;  %v1717_v29 = vpack.c.bf16 %v1319_v17, %v1318_v12  ;;  %v1361_v30 = vmul.f32 %v1343_v1, %v1321_v18  ;;  %v1718_v31 = vpack.c.bf16 %v1321_v18, %v1320_v13 }
 0x31c   : > { %v1367_v32 = vadd.f32 %v1366_v2, %v1358_v21  ;;  %v1385_v33 = vadd.f32 %v1384_v3, %v1360_v22  ;;  %v1362_v34 = vmul.f32 %v1348_v27, %v1322_v23  ;;  %v1364_v35 = vmul.f32 %v1348_v27, %v1324_v24 }
 0x31d   : > { %v1376_v36 = vadd.f32 %v1375_v11, %v1359_v28  ;;  %1460 = vst [vmem:[%s2222_s10 + $0x20] sm:$0xff] %v1717_v29  ;;  %v1394_v37 = vadd.f32 %v1393_v16, %v1361_v30  ;;  %1461 = vst [vmem:[%s2222_s10 + $0x28] sm:$0xff] %v1718_v31  ;;  %v1323_v38 = vmax.f32 %v1254_v25, 0.0  ;;  %v1325_v39 = vmax.f32 %v1307_v26, 0.0 }
 0x31e   : > { %v1368_v40 = vadd.f32 %v1367_v32, %v1362_v34  ;;  %v1386_v41 = vadd.f32 %v1385_v33, %v1364_v35 }
 0x31f   : > { %v1363_v42 = vmul.f32 %v1348_v27, %v1323_v38  ;;  %v1719_v43 = vpack.c.bf16 %v1323_v38, %v1322_v23  ;;  %v1365_v44 = vmul.f32 %v1348_v27, %v1325_v39  ;;  %v1720_v45 = vpack.c.bf16 %v1325_v39, %v1324_v24 }
 0x320   : > { %v1369_v46 = vrot.slane %v1368_v40, 4  ;;  %v1387_v47 = vrot.slane %v1386_v41, 4 }
 0x321   : > { %v1377_v48 = vadd.f32 %v1376_v36, %v1363_v42  ;;  %1462 = vst [vmem:[%s2222_s10 + $0x30] sm:$0xff] %v1719_v43  ;;  %v1395_v0 = vadd.f32 %v1394_v37, %v1365_v44  ;;  %1463 = vst [vmem:[%s2222_s10 + $0x38] sm:$0xff] %v1720_v45 }
 0x322   : > { %v1370_v49 = vadd.f32 %v1369_v46, %v1368_v40  ;;  %v1388_v50 = vadd.f32 %v1387_v47, %v1386_v41 }
 0x323   : > { %1819 = shalt.err (!%p1816_p5)
}
 0x324   : > { %s1820_s10 = scalar_lea.hbm %s2235_s24, 1024  ;;  %s1824_s28 = scalar_lea.hbm %s2329_s8, 2048 }
 0x325   : > { %p1821_p6 = scmp.ne.s32.totalorder %s2235_s24, %s1820_s10  ;;  %p1825_p10 = scmp.lt.u32.totalorder %s2235_s24, %s2329_s8 }
 0x326   : > { %p1826_p11 = scmp.lt.u32.totalorder %s1824_s28, %s1820_s10  ;;  %p1828_p13 = scmp.lt.u32.totalorder %s1820_s10, %s2235_s24 }
 0x327   : > { %p1822_p7 = pnand %p1821_p6, %p2018_p4 }
 0x328   : > { %p1827_p12 = por %p1826_p11, %p1825_p10 }
 0x329   : > { %p1823_p9 = pneg %p1822_p7 }
 0x32a   : > { %p1829_p0 = por %p1828_p13, %p1827_p12 }
 0x32c   : > { %p1830_p1 = pnand %p1829_p0, %p1823_p9 }
 0x32e   : > { %1833 = shalt.err (!%p1830_p1)
}
 0x32f   : > { %s1921_s27 = smov 256   ;;  %s1922_s7 = smov 16   ;;  %v1378_v51 = vrot.slane %v1377_v48, 4  ;;  %v1396_v52 = vrot.slane %v1395_v0, 4  ;;  %v1371_v53 = vrot.slane %v1370_v49, 2  ;;  %v1389_v54 = vrot.slane %v1388_v50, 2 }
 0x330   : > { %s2335_s0 = scalar_lea.sflag [#allocation4], %s2219_s29  ;;  %v1923_v61 = vmov 1966171168   ;;  %v1473_v63 = vlaneseq  ;;  %v1403_v6 = vstv %s2239_s25  ;;  %s1504_s21 = scalar_lea.sflag [#allocation6], %s2219_s29 }
 0x331   : > { %1723 = dma.vmem_to_hbm [thread:$0]  (%p2018_p4), %s2237_s17, 1024, %s2235_s24, %s2335_s0, %s1921_s27, %s1921_s27, %s1922_s7   ;;  %v1379_v55 = vadd.f32 %v1378_v51, %v1377_v48  ;;  %v1397_v56 = vadd.f32 %v1396_v52, %v1395_v0  ;;  %v1372_v57 = vadd.f32 %v1371_v53, %v1370_v49  ;;  %v1390_v58 = vadd.f32 %v1389_v54, %v1388_v50 }
 0x332   : > { %v1471_v62 = vunpack.c.l.s4 %v1923_v61  ;;  %v1474_v11 = vshrl.u32 %v1473_v63, 7  ;;  %s1655_s0 = sshll.u32 %s2219_s29, 2  ;;  %s1722_s17 = sshll.u32 %s1908_s14, 6  ;;  %vm1495_vm4 = vcmp.lt.s32.totalorder %v1473_v63, 512 }
 0x333   : > { %v1380_v59 = vrot.slane %v1379_v55, 2  ;;  %v1398_v60 = vrot.slane %v1397_v56, 2  ;;  %v1373_v1 = vrot.slane %v1372_v57, 1  ;;  %v1391_v2 = vrot.slane %v1390_v58, 1  ;;  %s364_s24 = scalar_lea.vmem [#allocation5], %s1655_s0  ;;  %s2273_s19 = scalar_lea.hbm %s2330_s9, %s1722_s17 }
 0x334   : > { %v1472_v10 = vunpack.c.0.s8 %v1471_v62  ;;  %s1538_s25 = sshll.u32 %s364_s24, 4  ;;  %s1924_s14 = smov [#allocation5]   ;;  %s2275_s25 = int_to_ptr.vmem [resolvable:$true] %s1538_s25 }
 0x335   : > { %v1381_v3 = vadd.f32 %v1380_v59, %v1379_v55  ;;  %v1399_v4 = vadd.f32 %v1398_v60, %v1397_v56  ;;  %v1374_v5 = vadd.f32 %v1373_v1, %v1372_v57  ;;  %v1392_v7 = vadd.f32 %v1391_v2, %v1390_v58  ;;  %s1834_s28 = scalar_lea.vmem %s2275_s25, 64  ;;  %s1838_s30 = sshll.u32 %s1924_s14, 4  ;;  %s1839_s30 = int_to_ptr.vmem [resolvable:$false] %s1838_s30 }
 0x336   : > { %v1475_v18 = vsub.s32 %v1472_v10, %v1474_v11  ;;  %p1835_p2 = scmp.ne.s32.totalorder %s2275_s25, %s1834_s28  ;;  %s1840_s27 = scalar_lea.vmem %s1839_s30, 128 }
 0x337   : > { %v1382_v8 = vrot.slane %v1381_v3, 1  ;;  %v1400_v9 = vrot.slane %v1399_v4, 1  ;;  %v1404_v12 = vadd.f32 %v1403_v6, %v1374_v5  ;;  %v1406_v13 = vadd.f32 %v1403_v6, %v1392_v7  ;;  %p1841_p6 = scmp.lt.s32.totalorder %s2275_s25, %s1839_s30  ;;  %p1842_p7 = scmp.lt.s32.totalorder %s1840_s27, %s1834_s28 }
 0x338   : > { %p1836_p3 = pnand %p1835_p2, %p2018_p4 }
 0x339   : > { %v1383_v14 = vadd.f32 %v1382_v8, %v1381_v3  ;;  %v1401_v15 = vadd.f32 %v1400_v9, %v1399_v4  ;;  %p1843_p9 = por %p1842_p7, %p1841_p6 }
 0x33a   : > { %p1837_p5 = pneg %p1836_p3 }
 0x33b   : > { %v1405_v16 = vadd.f32 %v1403_v6, %v1383_v14  ;;  %v1407_v17 = vadd.f32 %v1403_v6, %v1401_v15 }
 0x33c   : > { %p1844_p10 = pnand %p1843_p9, %p1837_p5 }
 0x33d   : > { %v1468_v19 = vcombine.low %v1404_v12, %v1405_v16  ;;  %v1469_v20 = vcombine.low %v1406_v13, %v1407_v17 }
 0x33f   : > { %v1476_v21 = vrot.slane %v1468_v19, %v1475_v18  ;;  %v1483_v22 = vrot.slane %v1469_v20, %v1475_v18 }
 0x341   : > { %v1484_v23 = vcombine.low %v1476_v21, %v1483_v22 }
 0x343   : > { %v1491_v24 = vrot.slane %v1484_v23, %v1475_v18 }
 0x345   : > { %1497 = vst.msk [vmem:[%s364_s24] sm:$0xf] %vm1495_vm4, %v1491_v24 }
 0x346   : > { %1847 = shalt.err (!%p1844_p10)
}
 0x347   : > { %s1848_s29 = scalar_lea.hbm %s2273_s19, 64  ;;  %s1852_s17 = scalar_lea.hbm %s2330_s9, 128 }
 0x348   : > { %p1849_p11 = scmp.ne.s32.totalorder %s2273_s19, %s1848_s29  ;;  %p1853_p0 = scmp.lt.u32.totalorder %s2273_s19, %s2330_s9 }
 0x349   : > { %p1854_p1 = scmp.lt.u32.totalorder %s1852_s17, %s1848_s29  ;;  %p1856_p3 = scmp.lt.u32.totalorder %s1848_s29, %s2273_s19 }
 0x34a   : > { %p1850_p12 = pnand %p1849_p11, %p2018_p4 }
 0x34b   : > { %p1855_p2 = por %p1854_p1, %p1853_p0 }
 0x34c   : > { %p1851_p13 = pneg %p1850_p12 }
 0x34d   : > { %p1857_p5 = por %p1856_p3, %p1855_p2 }
 0x34f   : > { %p1858_p6 = pnand %p1857_p5, %p1851_p13 }
 0x351   : > { %1861 = shalt.err (!%p1858_p6)
}
 0x352   : > { %1724 = dma.vmem_to_hbm [thread:$0]  (%p2018_p4), %s2275_s25, 64, %s2273_s19, %s1504_s21  }
 0x353 PF: > { %p1734_p7 = scmp.ge.s32.totalorder %s1916_s16, 2  ;;  %s1550_s10 = sand.u32 1, %s1896_s11  }
 0x354   : > { %s1551_s28 = scalar_lea.sflag [#allocation4], %s1550_s10 }
 0x355   : > { %p1728_p9 = pnand %p1734_p7, %p2025_p8 }
 0x357   : > { %1887 = dma.done.wait (!%p1728_p9), %s1551_s28, 1024  }
 0x358   : > { %1889 = vsyncadd (!%p1728_p9), %s1551_s28, 4294966272  ;;  %s1560_s14 = scalar_lea.sflag [#allocation6], %s1550_s10 }
 0x359   : > { %1891 = dma.done.wait (!%p1728_p9), %s1560_s14, 64  }
 0x35a   : > { %1893 = vsyncadd (!%p1728_p9), %s1560_s14, 4294967232  ;;  %s27_s16 = sadd.s32 1, %s1916_s16   ;;  %s2336_s11 = smov %s1900_s12 }
 0x35b   : > { %p24_p10 = scmp.ge.s32.totalorder %s27_s16, 4   ;;  %s2337_s12 = smov %s1904_s13 }
 0x35c   : > { %s2338_s13 = smov %s2031_s23  ;;  %s2339_s14 = smov %s1912_s15 }
 0x35d   : > { %s2340_s15 = smov %s2342_s18  ;;  %26 = sbr.rel (!%p24_p10) target bundleno = 9 (0x9), region = 104 }
 0x364   :  { %1565 = vsyncpa [#allocation4], 1 }
 0x365   :  { %1567 = vsyncpa [#allocation4 + $0x1], 1 }
 0x366   :  { %1568 = vsyncpa [#allocation6], 1 }
 0x367   :  { %1570 = vsyncpa [#allocation6 + $0x1], 1 }

</bundles_post_ra>
